<compile_context>
chip_gen: v6e
topology: v6e:2x2x1
jax: 0.10.0
libtpu: 0.0.40
codegen_flags: <defaults>
</compile_context>

<pallas_src>
import functools
import math

import jax
import jax.numpy as jnp
from jax import lax
from jax.experimental import pallas as pl
from jax.experimental.pallas import tpu as pltpu


# dot_general dimension numbers contracting the last dim of both operands
# ("NT" matmul) -- MXU-native, no transposed operands materialized.
_NT_DIMS = (((1,), (1,)), ((), ()))


def _round_up(x, m):
    return ((x + m - 1) // m) * m


def _self_attn_kernel(x_q_ref, x_kv_ref, a_ref, wv_ref, gamma_ref,   # inputs
                      o_ref,                                          # output
                      q_proj_sc, m_sc, l_sc, acc_sc,                  # scratch
                      *, compute_dtype, n_valid, mask_kv, approx_recip):
    """One (batch, q-tile, kv-tile) grid step of SAGAN self-attention.

    x_q_ref   : (1, C, tq)   query / residual columns of x (f32)
    x_kv_ref  : (1, C, tkv)  key+value columns of x (compute dtype stream)
    a_ref     : (C, C)       A = Wq @ Wk^T         (compute dtype)
    wv_ref    : (C, C)       Wv in (C_out, C_in)   (compute dtype)
    gamma_ref : (1,)         SMEM scalar
    o_ref     : (1, C, tq)   gamma * attention(x) + x for this query tile
    q_proj_sc : (tq, C)      x_q^T @ A, staged once per query tile
    m_sc,l_sc : (tq, 1)      online-softmax running max / sum   (f32)
    acc_sc    : (C, tq)      unnormalized output accumulator    (f32)
    """
    ki = pl.program_id(2)
    nk = pl.num_programs(2)
    c_dim = acc_sc.shape[0]
    tkv = x_kv_ref.shape[2]

    @pl.when(ki == 0)
    def _init():
        # Hoist the bilinear form A onto the query side: one (tq,C)@(C,C)
        # matmul per *query tile* instead of an A-apply every kv step.
        q_t = jnp.transpose(x_q_ref[0]).astype(compute_dtype)           # (tq, C)
        q_proj_sc[...] = jnp.dot(q_t, a_ref[...],
                                 preferred_element_type=compute_dtype)  # (tq, C)
        m_sc[...] = jnp.full(m_sc.shape, -jnp.inf, m_sc.dtype)
        l_sc[...] = jnp.zeros(l_sc.shape, l_sc.dtype)
        acc_sc[...] = jnp.zeros(acc_sc.shape, acc_sc.dtype)

    x_k = x_kv_ref[0]                                                   # (C, tkv)

    # Value projection for this kv block: (C,C)@(C,tkv) -- tiny LHS push count.
    v_blk = jnp.dot(wv_ref[...], x_k,
                    preferred_element_type=compute_dtype)               # (C, tkv)

    # energy[i, j] = x_i^T A x_j for this (q-tile, kv-tile) block.
    e = jnp.dot(q_proj_sc[...], x_k,
                preferred_element_type=jnp.float32)                     # (tq, tkv)

    if mask_kv:
        col = ki * tkv + lax.broadcasted_iota(jnp.int32, (1, tkv), 1)
        e = jnp.where(col < n_valid, e, -jnp.inf)

    # Online (flash-style) softmax over the kv axis; all stats in f32.
    m_prev = m_sc[...]                                                  # (tq, 1)
    m_new = jnp.maximum(m_prev, jnp.max(e, axis=-1, keepdims=True))
    alpha = jnp.exp(m_prev - m_new)                                     # (tq, 1)
    p = jnp.exp(e - m_new)                                              # (tq, tkv)
    l_sc[...] = alpha * l_sc[...] + jnp.sum(p, axis=-1, keepdims=True)
    m_sc[...] = m_new

    # acc stays (C, tq): the PV matmul LHS is the C-row value block
    # (ceil(C/8) pushes/step instead of ceil(tq/8)).  The (tq,1) -> (C,tq)
    # broadcast of alpha is a K=1 NT outer product (trivial), which avoids any
    # sublane->lane relayout of the stats vectors.
    ones_c = jnp.ones((c_dim, 1), jnp.float32)
    alpha_bc = lax.dot_general(ones_c, alpha, _NT_DIMS,
                               preferred_element_type=jnp.float32)      # (C, tq)
    pv = lax.dot_general(v_blk, p.astype(compute_dtype), _NT_DIMS,
                         preferred_element_type=jnp.float32)            # (C, tq)
    acc_sc[...] = alpha_bc * acc_sc[...] + pv

    @pl.when(ki == nk - 1)
    def _finalize():
        inv_l = pl.reciprocal(l_sc[...], approx=approx_recip)           # (tq, 1)
        inv_bc = lax.dot_general(jnp.ones((c_dim, 1), jnp.float32), inv_l,
                                 _NT_DIMS, preferred_element_type=jnp.float32)
        attn_out = acc_sc[...] * inv_bc                                 # (C, tq)
        o_ref[0] = (gamma_ref[0] * attn_out
                    + x_q_ref[0]).astype(o_ref.dtype)                   # (C, tq)


def self_attn_forward(x_nchw, wq, wk, wv, gamma, *, block_q=512, block_kv=512,
                      compute_dtype=jnp.bfloat16):
    """SAGAN Self_Attn forward.

    x_nchw : (B, C, W, H) float32
    wq, wk : (C, C//8)  (C_in, C_out) layout (transpose of the PyTorch Conv2d weight)
    wv     : (C, C)     (C_in, C_out) layout
    gamma  : (1,)

    compute_dtype=bfloat16 is the fast path on every TPU generation (v5e/v6e/
    v7x): only MXU operands are bf16, softmax stats and the accumulator stay
    f32.  Use float32 for an exact-math reference path.
    """
    B, C, W, H = x_nchw.shape
    N = W * H
    compute_dtype = jnp.dtype(compute_dtype)

    # Channels on sublanes, flattened spatial dim on lanes: free reshape only.
    x_flat = x_nchw.reshape(B, C, N)

    # Fold Wq/Wk into A = Wq @ Wk^T (energy[i,j] = x_i^T A x_j); Wv transposed
    # to the (C_out, C_in) layout so v = wv_t @ x.
    a_mat = jnp.dot(wq, wk.T).astype(compute_dtype)          # (C, C)
    wv_t = wv.T.astype(compute_dtype)                        # (C, C)

    # ---- Tile selection: multiples of 128, clamped; pad N if needed. -------
    n128 = _round_up(N, 128)
    tq = min(_round_up(block_q, 128), n128)
    tkv = min(_round_up(block_kv, 128), n128)
    lcm = tq * tkv // math.gcd(tq, tkv)
    n_pad = _round_up(N, lcm)
    mask_kv = n_pad != N
    if mask_kv:
        x_flat = jnp.pad(x_flat, ((0, 0), (0, 0), (0, n_pad - N)))
    n_q = n_pad // tq
    n_kv = n_pad // tkv

    # kv stream in compute dtype (halves the dominant, rescanned HBM stream
    # when bf16); the f32 x is kept only for the query / residual path.
    x_kv = x_flat.astype(compute_dtype)

    kernel = functools.partial(
        _self_attn_kernel, compute_dtype=compute_dtype, n_valid=N,
        mask_kv=mask_kv, approx_recip=True)

    itemsize = compute_dtype.itemsize
    cost = pl.CostEstimate(
        flops=int(B * n_q * n_kv * (4 * tq * tkv * C + 2 * C * C * tkv)
                  + B * n_q * 2 * tq * C * C),
        transcendentals=int(B * n_q * n_kv * tq * (tkv + 1)),
        bytes_accessed=int(B * n_q * C * n_pad * itemsize    # kv stream (rescanned)
                           + 2 * B * C * n_pad * 4           # x_q read + out write
                           + 2 * C * C * itemsize),
    )

    out_flat = pl.pallas_call(
        kernel,
        out_shape=jax.ShapeDtypeStruct((B, C, n_pad), x_nchw.dtype),
        grid=(B, n_q, n_kv),
        in_specs=[
            pl.BlockSpec((1, C, tq), lambda b, qi, ki: (b, 0, qi)),   # x_q / residual
            pl.BlockSpec((1, C, tkv), lambda b, qi, ki: (b, 0, ki)),  # kv stream
            pl.BlockSpec((C, C), lambda b, qi, ki: (0, 0)),           # A = Wq Wk^T
            pl.BlockSpec((C, C), lambda b, qi, ki: (0, 0)),           # Wv^T
            pl.BlockSpec(memory_space=pltpu.MemorySpace.SMEM),        # gamma scalar
        ],
        out_specs=pl.BlockSpec((1, C, tq), lambda b, qi, ki: (b, 0, qi)),
        scratch_shapes=[
            pltpu.VMEM((tq, C), compute_dtype),    # q_proj = x_q^T A (per q tile)
            pltpu.VMEM((tq, 1), jnp.float32),      # running max
            pltpu.VMEM((tq, 1), jnp.float32),      # running sum
            pltpu.VMEM((C, tq), jnp.float32),      # output accumulator
        ],
        compiler_params=pltpu.CompilerParams(
            dimension_semantics=("parallel", "parallel", "arbitrary"),
            # Safe on every generation (incl. v7x's 64 MiB physical VMEM);
            # actual usage for the default tiles is far below this.
            vmem_limit_bytes=48 * 1024 * 1024,
        ),
        cost_estimate=cost,
    )(x_flat, x_kv, a_mat, wv_t, gamma)

    if mask_kv:
        out_flat = out_flat[:, :, :N]
    # (B, C, N) -> (B, C, W, H): free reshape, no transpose.
    return out_flat.reshape(B, C, W, H)


def _reference(x_nchw, wq, wk, wv, gamma):
    """Pure-JAX reference mirroring the PyTorch forward exactly (f32)."""
    B, C, W, H = x_nchw.shape
    N = W * H
    x_flat = x_nchw.reshape(B, C, N)                       # (B, C, N)
    proj_q = jnp.einsum('bcn,ck->bnk', x_flat, wq)         # (B, N, C8)
    proj_k = jnp.einsum('bcn,ck->bkn', x_flat, wk)         # (B, C8, N)
    energy = jnp.einsum('bnk,bkm->bnm', proj_q, proj_k)    # (B, N, N)
    att = jax.nn.softmax(energy, axis=-1)
    proj_v = jnp.einsum('bcn,cd->bdn', x_flat, wv)         # (B, C, N)
    out = jnp.einsum('bcn,bmn->bcm', proj_v, att)          # (B, C, N)
    out = out.reshape(B, C, W, H)
    return gamma[0] * out + x_nchw


if __name__ == "__main__":
    B, C, W, H = 2, 32, 16, 16
    C8 = C // 8

    key = jax.random.PRNGKey(0)
    kx, kq, kk, kv, kx2 = jax.random.split(key, 5)

    x = jax.random.normal(kx, (B, C, W, H), dtype=jnp.float32)
    # Conv2d 1x1 weights stored as (C_in, C_out) (transpose of PyTorch layout).
    wq = jax.random.normal(kq, (C, C8), dtype=jnp.float32) * 0.1
    wk = jax.random.normal(kk, (C, C8), dtype=jnp.float32) * 0.1
    wv = jax.random.normal(kv, (C, C), dtype=jnp.float32) * 0.1
    # The module initializes gamma = 0 (output == x); use a non-zero value so
    # the attention path is actually exercised.
    gamma = jnp.array([0.5], dtype=jnp.float32)

    ref = _reference(x, wq, wk, wv, gamma)

    # f32 MXU path with small tiles: exercises the multi-step online softmax
    # and accumulator rescaling; tight check against the pure-JAX reference.
    out_f32 = self_attn_forward(x, wq, wk, wv, gamma,
                                block_q=128, block_kv=128,
                                compute_dtype=jnp.float32)
    out_f32 = jax.block_until_ready(out_f32)
    assert out_f32.shape == (B, C, W, H)
    assert jnp.allclose(out_f32, ref, atol=2e-3, rtol=2e-3), \
        float(jnp.max(jnp.abs(out_f32 - ref)))

    # bf16 MXU fast path (recommended on v5e/v6e/v7x) with default tiles.
    out_bf16 = self_attn_forward(x, wq, wk, wv, gamma,
                                 compute_dtype=jnp.bfloat16)
    out_bf16 = jax.block_until_ready(out_bf16)
    assert jnp.allclose(out_bf16, ref, atol=5e-2, rtol=5e-2), \
        float(jnp.max(jnp.abs(out_bf16 - ref)))

    # Non-divisible spatial size (N = 144): exercises the pad + kv-mask path.
    x2 = jax.random.normal(kx2, (B, C, 12, 12), dtype=jnp.float32)
    ref2 = _reference(x2, wq, wk, wv, gamma)
    out2 = self_attn_forward(x2, wq, wk, wv, gamma,
                             block_q=128, block_kv=128,
                             compute_dtype=jnp.float32)
    out2 = jax.block_until_ready(out2)
    assert jnp.allclose(out2, ref2, atol=2e-3, rtol=2e-3), \
        float(jnp.max(jnp.abs(out2 - ref2)))

    print("KERNEL_OK")
</pallas_src>

<mosaic_0001>
module attributes {stable_mosaic.version = 11 : i64} {
  func.func @_self_attn_kernel(%arg0: i32, %arg1: i32, %arg2: i32, %arg3: memref<1x32x128xf32, #tpu.memory_space<vmem>>, %arg4: memref<1x32x128xf32, #tpu.memory_space<vmem>>, %arg5: memref<32x32xf32, #tpu.memory_space<vmem>>, %arg6: memref<32x32xf32, #tpu.memory_space<vmem>>, %arg7: memref<1xf32, #tpu.memory_space<smem>>, %arg8: memref<1x32x128xf32, #tpu.memory_space<vmem>>, %arg9: memref<128x32xf32, #tpu.memory_space<vmem>>, %arg10: memref<128x1xf32, #tpu.memory_space<vmem>>, %arg11: memref<128x1xf32, #tpu.memory_space<vmem>>, %arg12: memref<32x128xf32, #tpu.memory_space<vmem>>) attributes {dimension_semantics = [#tpu.dimension_semantics<parallel>, #tpu.dimension_semantics<parallel>, #tpu.dimension_semantics<arbitrary>], iteration_bounds = array<i64: 2, 2, 2>, scalar_prefetch = 0 : i64, scratch_operands = 4 : i64, tpu.core_type = #tpu.core_type<tc>, window_params = [{transform_indices = @transform_0, window_bounds = array<i64: 1, 32, 128>}, {transform_indices = @transform_1, window_bounds = array<i64: 1, 32, 128>}, {pipeline_mode = #tpu.pipeline_mode<synchronous>, transform_indices = @transform_2, window_bounds = array<i64: 32, 32>}, {pipeline_mode = #tpu.pipeline_mode<synchronous>, transform_indices = @transform_3, window_bounds = array<i64: 32, 32>}, {transform_indices = @transform_4, window_bounds = array<i64: 1>}, {transform_indices = @transform_5, window_bounds = array<i64: 1, 32, 128>}]} {
    %c0_i32 = arith.constant 0 : i32
    %0 = arith.cmpi eq, %arg2, %c0_i32 : i32
    %1 = arith.extui %0 : i1 to i32
    %c0_i32_0 = arith.constant 0 : i32
    %2 = arith.cmpi ne, %1, %c0_i32_0 : i32
    scf.if %2 {
      %c0_26 = arith.constant 0 : index
      %c0_27 = arith.constant 0 : index
      %c0_28 = arith.constant 0 : index
      %35 = vector.load %arg3[%c0_26, %c0_27, %c0_28] : memref<1x32x128xf32, #tpu.memory_space<vmem>>, vector<1x32x128xf32>
      %36 = vector.shape_cast %35 : vector<1x32x128xf32> to vector<32x128xf32>
      %37 = tpu.transpose %36, [1, 0] : vector<32x128xf32> -> vector<128x32xf32>
      %c0_29 = arith.constant 0 : index
      %c0_30 = arith.constant 0 : index
      %38 = vector.load %arg5[%c0_29, %c0_30] : memref<32x32xf32, #tpu.memory_space<vmem>>, vector<32x32xf32>
      %cst_31 = arith.constant dense<0.000000e+00> : vector<128x32xf32>
      %39 = tpu.matmul %37, %38, %cst_31 {dimension_numbers = #tpu.dot_dimension_numbers<[1], [0], [0], [1], [0, 0, 1, 1], [], []>} : vector<128x32xf32>, vector<32x32xf32>, vector<128x32xf32> -> vector<128x32xf32>
      %c0_32 = arith.constant 0 : index
      %c0_33 = arith.constant 0 : index
      %40 = vector.load %arg9[%c0_32, %c0_33] : memref<128x32xf32, #tpu.memory_space<vmem>>, vector<128x32xf32>
      tpu.vector_store %arg9[%c0_32, %c0_33], %39 {strides = array<i32>} : memref<128x32xf32, #tpu.memory_space<vmem>>, vector<128x32xf32>,
      %cst_34 = arith.constant 0xFF800000 : f32
      %41 = vector.broadcast %cst_34 : f32 to vector<128x1xf32>
      %c0_35 = arith.constant 0 : index
      %c0_36 = arith.constant 0 : index
      %42 = vector.load %arg10[%c0_35, %c0_36] : memref<128x1xf32, #tpu.memory_space<vmem>>, vector<128x1xf32>
      tpu.vector_store %arg10[%c0_35, %c0_36], %41 {strides = array<i32>} : memref<128x1xf32, #tpu.memory_space<vmem>>, vector<128x1xf32>,
      %cst_37 = arith.constant 0.000000e+00 : f32
      %43 = vector.broadcast %cst_37 : f32 to vector<128x1xf32>
      %c0_38 = arith.constant 0 : index
      %c0_39 = arith.constant 0 : index
      %44 = vector.load %arg11[%c0_38, %c0_39] : memref<128x1xf32, #tpu.memory_space<vmem>>, vector<128x1xf32>
      tpu.vector_store %arg11[%c0_38, %c0_39], %43 {strides = array<i32>} : memref<128x1xf32, #tpu.memory_space<vmem>>, vector<128x1xf32>,
      %cst_40 = arith.constant 0.000000e+00 : f32
      %45 = vector.broadcast %cst_40 : f32 to vector<32x128xf32>
      %c0_41 = arith.constant 0 : index
      %c0_42 = arith.constant 0 : index
      %46 = vector.load %arg12[%c0_41, %c0_42] : memref<32x128xf32, #tpu.memory_space<vmem>>, vector<32x128xf32>
      tpu.vector_store %arg12[%c0_41, %c0_42], %45 {strides = array<i32>} : memref<32x128xf32, #tpu.memory_space<vmem>>, vector<32x128xf32>,
    } else {
    }
    %c0 = arith.constant 0 : index
    %c0_1 = arith.constant 0 : index
    %c0_2 = arith.constant 0 : index
    %3 = vector.load %arg4[%c0, %c0_1, %c0_2] : memref<1x32x128xf32, #tpu.memory_space<vmem>>, vector<1x32x128xf32>
    %4 = vector.shape_cast %3 : vector<1x32x128xf32> to vector<32x128xf32>
    %c0_3 = arith.constant 0 : index
    %c0_4 = arith.constant 0 : index
    %5 = vector.load %arg6[%c0_3, %c0_4] : memref<32x32xf32, #tpu.memory_space<vmem>>, vector<32x32xf32>
    %cst = arith.constant dense<0.000000e+00> : vector<32x128xf32>
    %6 = tpu.matmul %5, %4, %cst {dimension_numbers = #tpu.dot_dimension_numbers<[1], [0], [0], [1], [0, 0, 1, 1], [], []>} : vector<32x32xf32>, vector<32x128xf32>, vector<32x128xf32> -> vector<32x128xf32>
    %c0_5 = arith.constant 0 : index
    %c0_6 = arith.constant 0 : index
    %7 = vector.load %arg9[%c0_5, %c0_6] : memref<128x32xf32, #tpu.memory_space<vmem>>, vector<128x32xf32>
    %cst_7 = arith.constant dense<0.000000e+00> : vector<128x128xf32>
    %8 = tpu.matmul %7, %4, %cst_7 {dimension_numbers = #tpu.dot_dimension_numbers<[1], [0], [0], [1], [0, 0, 1, 1], [], []>} : vector<128x32xf32>, vector<32x128xf32>, vector<128x128xf32> -> vector<128x128xf32>
    %c0_8 = arith.constant 0 : index
    %c0_9 = arith.constant 0 : index
    %9 = vector.load %arg10[%c0_8, %c0_9] : memref<128x1xf32, #tpu.memory_space<vmem>>, vector<128x1xf32>
    %cst_10 = arith.constant dense<0xFF800000> : vector<128xf32>
    %10 = vector.multi_reduction <maximumf>, %8, %cst_10 [1] : vector<128x128xf32> to vector<128xf32>
    %11 = vector.shape_cast %10 : vector<128xf32> to vector<128x1xf32>
    %12 = arith.maximumf %9, %11 : vector<128x1xf32>
    %13 = arith.subf %9, %12 : vector<128x1xf32>
    %14 = math.exp %13 : vector<128x1xf32>
    %15 = vector.broadcast %12 : vector<128x1xf32> to vector<128x128xf32>
    %16 = arith.subf %8, %15 : vector<128x128xf32>
    %17 = math.exp %16 : vector<128x128xf32>
    %c0_11 = arith.constant 0 : index
    %c0_12 = arith.constant 0 : index
    %18 = vector.load %arg11[%c0_11, %c0_12] : memref<128x1xf32, #tpu.memory_space<vmem>>, vector<128x1xf32>
    %19 = arith.mulf %14, %18 : vector<128x1xf32>
    %cst_13 = arith.constant dense<0.000000e+00> : vector<128xf32>
    %20 = vector.multi_reduction <add>, %17, %cst_13 [1] : vector<128x128xf32> to vector<128xf32>
    %21 = vector.shape_cast %20 : vector<128xf32> to vector<128x1xf32>
    %22 = arith.addf %19, %21 : vector<128x1xf32>
    %c0_14 = arith.constant 0 : index
    %c0_15 = arith.constant 0 : index
    %23 = vector.load %arg11[%c0_14, %c0_15] : memref<128x1xf32, #tpu.memory_space<vmem>>, vector<128x1xf32>
    tpu.vector_store %arg11[%c0_14, %c0_15], %22 {strides = array<i32>} : memref<128x1xf32, #tpu.memory_space<vmem>>, vector<128x1xf32>,
    %c0_16 = arith.constant 0 : index
    %c0_17 = arith.constant 0 : index
    %24 = vector.load %arg10[%c0_16, %c0_17] : memref<128x1xf32, #tpu.memory_space<vmem>>, vector<128x1xf32>
    tpu.vector_store %arg10[%c0_16, %c0_17], %12 {strides = array<i32>} : memref<128x1xf32, #tpu.memory_space<vmem>>, vector<128x1xf32>,
    %cst_18 = arith.constant 1.000000e+00 : f32
    %25 = vector.broadcast %cst_18 : f32 to vector<32x1xf32>
    %cst_19 = arith.constant dense<0.000000e+00> : vector<32x128xf32>
    %26 = tpu.matmul %25, %14, %cst_19 {dimension_numbers = #tpu.dot_dimension_numbers<[1], [1], [0], [0], [0, 0, 1, 0], [], []>} : vector<32x1xf32>, vector<128x1xf32>, vector<32x128xf32> -> vector<32x128xf32>
    %cst_20 = arith.constant dense<0.000000e+00> : vector<32x128xf32>
    %27 = tpu.matmul %6, %17, %cst_20 {dimension_numbers = #tpu.dot_dimension_numbers<[1], [1], [0], [0], [0, 0, 1, 0], [], []>} : vector<32x128xf32>, vector<128x128xf32>, vector<32x128xf32> -> vector<32x128xf32>
    %c0_21 = arith.constant 0 : index
    %c0_22 = arith.constant 0 : index
    %28 = vector.load %arg12[%c0_21, %c0_22] : memref<32x128xf32, #tpu.memory_space<vmem>>, vector<32x128xf32>
    %29 = arith.mulf %26, %28 : vector<32x128xf32>
    %30 = arith.addf %29, %27 : vector<32x128xf32>
    %c0_23 = arith.constant 0 : index
    %c0_24 = arith.constant 0 : index
    %31 = vector.load %arg12[%c0_23, %c0_24] : memref<32x128xf32, #tpu.memory_space<vmem>>, vector<32x128xf32>
    tpu.vector_store %arg12[%c0_23, %c0_24], %30 {strides = array<i32>} : memref<32x128xf32, #tpu.memory_space<vmem>>, vector<32x128xf32>,
    %c1_i32 = arith.constant 1 : i32
    %32 = arith.cmpi eq, %arg2, %c1_i32 : i32
    %33 = arith.extui %32 : i1 to i32
    %c0_i32_25 = arith.constant 0 : i32
    %34 = arith.cmpi ne, %33, %c0_i32_25 : i32
    scf.if %34 {
      %c0_26 = arith.constant 0 : index
      %c0_27 = arith.constant 0 : index
      %35 = vector.load %arg11[%c0_26, %c0_27] : memref<128x1xf32, #tpu.memory_space<vmem>>, vector<128x1xf32>
      %36 = tpu.reciprocal %35 {approx = true} : vector<128x1xf32> -> vector<128x1xf32>
      %cst_28 = arith.constant 1.000000e+00 : f32
      %37 = vector.broadcast %cst_28 : f32 to vector<32x1xf32>
      %cst_29 = arith.constant dense<0.000000e+00> : vector<32x128xf32>
      %38 = tpu.matmul %37, %36, %cst_29 {dimension_numbers = #tpu.dot_dimension_numbers<[1], [1], [0], [0], [0, 0, 1, 0], [], []>} : vector<32x1xf32>, vector<128x1xf32>, vector<32x128xf32> -> vector<32x128xf32>
      %c0_30 = arith.constant 0 : index
      %c0_31 = arith.constant 0 : index
      %39 = vector.load %arg12[%c0_30, %c0_31] : memref<32x128xf32, #tpu.memory_space<vmem>>, vector<32x128xf32>
      %40 = arith.mulf %39, %38 : vector<32x128xf32>
      %c0_32 = arith.constant 0 : index
      %41 = memref.load %arg7[%c0_32] : memref<1xf32, #tpu.memory_space<smem>>
      %42 = vector.broadcast %41 : f32 to vector<32x128xf32>
      %43 = arith.mulf %42, %40 : vector<32x128xf32>
      %c0_33 = arith.constant 0 : index
      %c0_34 = arith.constant 0 : index
      %c0_35 = arith.constant 0 : index
      %44 = vector.load %arg3[%c0_33, %c0_34, %c0_35] : memref<1x32x128xf32, #tpu.memory_space<vmem>>, vector<1x32x128xf32>
      %45 = vector.shape_cast %44 : vector<1x32x128xf32> to vector<32x128xf32>
      %46 = arith.addf %43, %45 : vector<32x128xf32>
      %c0_36 = arith.constant 0 : index
      %c0_37 = arith.constant 0 : index
      %c0_38 = arith.constant 0 : index
      %47 = vector.load %arg8[%c0_36, %c0_37, %c0_38] : memref<1x32x128xf32, #tpu.memory_space<vmem>>, vector<1x32x128xf32>
      %48 = vector.shape_cast %47 : vector<1x32x128xf32> to vector<32x128xf32>
      %49 = vector.shape_cast %46 : vector<32x128xf32> to vector<1x32x128xf32>
      tpu.vector_store %arg8[%c0_36, %c0_37, %c0_38], %49 {strides = array<i32>} : memref<1x32x128xf32, #tpu.memory_space<vmem>>, vector<1x32x128xf32>,
    } else {
    }
    return
  }
  func.func @transform_0(%arg0: i32, %arg1: i32, %arg2: i32) -> (i32, i32, i32) {
    %c0_i32 = arith.constant 0 : i32
    %c0_i32_0 = arith.constant 0 : i32
    return %arg0, %c0_i32, %arg1 : i32, i32, i32
  }
  func.func @transform_1(%arg0: i32, %arg1: i32, %arg2: i32) -> (i32, i32, i32) {
    %c0_i32 = arith.constant 0 : i32
    %c0_i32_0 = arith.constant 0 : i32
    return %arg0, %c0_i32, %arg2 : i32, i32, i32
  }
  func.func @transform_2(%arg0: i32, %arg1: i32, %arg2: i32) -> (i32, i32) {
    %c0_i32 = arith.constant 0 : i32
    %c0_i32_0 = arith.constant 0 : i32
    %c0_i32_1 = arith.constant 0 : i32
    return %c0_i32, %c0_i32_0 : i32, i32
  }
  func.func @transform_3(%arg0: i32, %arg1: i32, %arg2: i32) -> (i32, i32) {
    %c0_i32 = arith.constant 0 : i32
    %c0_i32_0 = arith.constant 0 : i32
    %c0_i32_1 = arith.constant 0 : i32
    return %c0_i32, %c0_i32_0 : i32, i32
  }
  func.func @transform_4(%arg0: i32, %arg1: i32, %arg2: i32) -> i32 {
    %c0_i32 = arith.constant 0 : i32
    %c0_i32_0 = arith.constant 0 : i32
    return %c0_i32 : i32
  }
  func.func @transform_5(%arg0: i32, %arg1: i32, %arg2: i32) -> (i32, i32, i32) {
    %c0_i32 = arith.constant 0 : i32
    %c0_i32_0 = arith.constant 0 : i32
    return %arg0, %c0_i32, %arg1 : i32, i32, i32
  }
}

</mosaic_0001>

<bundles_post_ra>
// kernel: tpu_custom_call.1
= control target key start
LH: loop header
LB: loop body
LE: loop exit
PB: predicated region body
PF: predicated region fallthrough
CT: control target
= control target key end

     0   :  { %s3721_s0 = inlined_call_operand.hbm [shape: f32[2,32,256], index: 0, kind: input, shape index: {}]   ;;  %s3722_s1 = inlined_call_operand.hbm [shape: f32[2,32,256], index: 1, kind: input, shape index: {}]   ;;  %s3723_s2 = inlined_call_operand.hbm [shape: f32[32,32], index: 2, kind: input, shape index: {}]   ;;  %s3724_s3 = inlined_call_operand.hbm [shape: f32[32,32], index: 3, kind: input, shape index: {}]   ;;  %s3725_s4 = inlined_call_operand.<no memory space> [shape: f32[1], index: 4, kind: input, shape index: {}]   ;;  %s3726_s5 = inlined_call_operand.hbm [shape: f32[2,32,256], index: 5, kind: output, shape index: {}]  }
   0x1   :  { %3749 = sst [smem:[#allocation34_spill]] %s3721_s0 }
   0x2   :  { %3750 = sst [smem:[#allocation35_spill]] %s3723_s2 }
   0x3   :  { %3751 = sst [smem:[#allocation36_spill]] %s3724_s3 }
   0x4   :  { %3752 = sst [smem:[#allocation37_spill]] %s3726_s5 }
   0x5   :  { %10 = sst [smem:[#allocation6]] %s3725_s4 }
   0x6   :  { %11 = vsyncpa [#allocation8], 0 }
   0x7   :  { %13 = vsyncpa [#allocation8 + $0x1], 0 }
   0x8   :  { %14 = vsyncpa [#allocation11], 0 }
   0x9   :  { %16 = vsyncpa [#allocation11 + $0x1], 0 }
   0xa   :  { %17 = vsyncpa [#allocation14], 0 }
   0xb   :  { %18 = vsyncpa [#allocation9], 0 }
   0xc   :  { %20 = vsyncpa [#allocation9 + $0x1], 0  ;;  %s2885_s20 = smov 0   ;;  %s2887_s21 = smov 0  }
   0xd   :  { %s2889_s22 = smov 0   ;;  %s2891_s23 = smov 0  }
   0xe   :  { %s2893_s24 = smov 0   ;;  %s2895_s25 = smov 0  }
   0xf   :  { %s2897_s4 = smov 0   ;;  %s2899_s26 = smov 0  }
  0x10   :  { %s2901_s27 = smov 0   ;;  %s2903_s28 = smov 0  }
  0x11   :  { %s2905_s29 = smov 0   ;;  %s2907_s30 = smov 0  }
  0x12   :  { %s2909_s6 = smov 0  }
  0x13 LB: > { %3753 = sst [smem:[#allocation21_spill]] %s2790_s21  ;;  %s2949_s7 = sadd.s32 4294967295, %s2834_s6   ;;  %s2834_s6 = sphi %s2909_s6, %s26_s6   ;;  %s2830_s30 = sphi %s2907_s30, %s3817_s30   ;;  %s2826_s29 = sphi %s2905_s29, %s3816_s29   ;;  %s2822_s28 = sphi %s2903_s28, %s3815_s28   ;;  %s2818_s27 = sphi %s2901_s27, %s3814_s27   ;;  %s2814_s26 = sphi %s2899_s26, %s3813_s26   ;;  %s2810_s4 = sphi %s2897_s4, %s3812_s4   ;;  %s2806_s25 = sphi %s2895_s25, %s3811_s25   ;;  %s2802_s24 = sphi %s2893_s24, %s3810_s24   ;;  %s2798_s23 = sphi %s2891_s23, %s3805_s23   ;;  %s2794_s22 = sphi %s2889_s22, %s3809_s22   ;;  %s2790_s21 = sphi %s2887_s21, %s3808_s21   ;;  %s2786_s20 = sphi %s2885_s20, %s3804_s20  }
  0x14   : > { %3754 = sst [smem:[#allocation22_spill]] %s2798_s23  ;;  %s1885_s8 = sadd.s32 4294967294, %s2834_s6  }
  0x15   : > { %3755 = sst [smem:[#allocation23_spill]] %s2802_s24  ;;  %p3728_p0 = scmp.eq.s32.totalorder %s2834_s6, 0 }
  0x16   : > { %3756 = sst [smem:[#allocation24_spill]] %s2810_s4  ;;  %p67_p1 = scmp.ne.s32.totalorder %s2802_s24, %s2798_s23 }
  0x17   : > { %3757 = sst [smem:[#allocation25_spill]] %s2814_s26  ;;  %p3727_p2 = scmp.eq.s32.totalorder %s2949_s7, 0 }
  0x18   : > { %3758 = sst [smem:[#allocation26_spill]] %s2818_s27  ;;  %p89_p3 = scmp.ne.s32.totalorder %s2794_s22, %s2790_s21 }
  0x19   : > { %3759 = sst [smem:[#allocation27_spill]] %s2949_s7  ;;  %p95_p4 = scmp.ne.s32.totalorder %s2790_s21, %s2786_s20 }
  0x1a   : > { %p2962_p6 = por %p3727_p2, %p67_p1  ;;  %p2968_p7 = por %p89_p3, %p3728_p0 }
  0x1b   : > { %p2974_p8 = por %p95_p4, %p3727_p2  ;;  %p190_p9 = scmp.eq.s32.totalorder %s1885_s8, 7 }
  0x1c   : > { %s3760_s9 = scalar_select %p2962_p6, 1, 0 }
  0x1d   : > { %s3763_s11 = scalar_select %p2974_p8, 1, 0 }
  0x1e   : > { %3761 = sst [smem:[#allocation28_spill]] %s3760_s9  ;;  %p1886_p10 = scmp.ge.s32.totalorder %s2834_s6, 1 }
  0x1f   : > { %3764 = sst [smem:[#allocation29_spill]] %s3763_s11  ;;  %p197_p11 = scmp.lt.s32.totalorder %s2834_s6, 9 }
  0x20   : > { %p2980_p12 = por %p190_p9, %p67_p1  ;;  %s2836_s14 = smov [#allocation12]  }
  0x21   : > { %p2984_p13 = pnand %p1886_p10, %p197_p11  ;;  %s209_s15 = sshll.u32 %s2836_s14, 4  ;;  %s210_s15 = int_to_ptr.vmem [resolvable:$true] %s209_s15 }
  0x22   : > { %s3765_s12 = scalar_select %p2980_p12, 1, 0 }
  0x23   : > { %p2339_p3 = pneg %p2984_p13  ;;  %p2359_p1 = scmp.lt.s32.totalorder %s2834_s6, 8 }
  0x24   : > { %3766 = sst [smem:[#allocation30_spill]] %s3765_s12  ;;  %s2589_s18 = scalar_lea.vmem %s210_s15, 512 }
  0x25   : > { %p2992_p4 = pnand %p2339_p3, %p3727_p2  ;;  %p3001_p9 = pnand %p2359_p1, %p2968_p7 }
  0x26   : > { %p2590_p11 = scmp.ne.s32.totalorder %s210_s15, %s2589_s18  ;;  %p2597_p2 = scmp.lt.s32.totalorder %s210_s15, %s210_s15 }
  0x27   : > { %p2580_p10 = pneg %p2992_p4  ;;  %p2598_p0 = scmp.lt.s32.totalorder %s2589_s18, %s2589_s18 }
  0x29   : > { %p2592_p5 = pnand %p2590_p11, %p2580_p10  ;;  %p2599_p12 = por %p2598_p0, %p2597_p2 }
  0x2b   : > { %p2593_p3 = pneg %p2592_p5 }
  0x2d   : > { %p2600_p8 = pnand %p2599_p12, %p2593_p3 }
  0x2f   : > { %2603 = shalt.err (!%p2600_p8)
}
  0x30   : > { %s3732_s19 = smov 128   ;;  %s3734_s20 = smov 8  }
  0x31   : > { %s3770_s2 = sld [smem:[#allocation35_spill]]  ;;  %s2839_s14 = smov [#allocation13]  }
  0x32   : > { %s222_s12 = sshll.u32 %s2839_s14, 4  ;;  %s223_s12 = int_to_ptr.vmem [resolvable:$true] %s222_s12 }
  0x33   : > { %s2615_s23 = scalar_lea.vmem %s223_s12, 512  ;;  %p2623_p7 = scmp.lt.s32.totalorder %s223_s12, %s223_s12 }
  0x34   : > { %p2616_p5 = scmp.ne.s32.totalorder %s223_s12, %s2615_s23  ;;  %p2624_p8 = scmp.lt.s32.totalorder %s2615_s23, %s2615_s23 }
  0x36   : > { %p2618_p0 = pnand %p2616_p5, %p2580_p10  ;;  %p2625_p12 = por %p2624_p8, %p2623_p7 }
  0x37   : > { %2342 = dma.hbm_to_vmem [thread:$0]  (!%p2992_p4), %s3770_s2, 512, %s210_s15, [#allocation11], %s3732_s19, %s3732_s19, %s3734_s20  }
  0x38   : > { %p2619_p2 = pneg %p2618_p0 }
  0x3a   : > { %p2626_p11 = pnand %p2625_p12, %p2619_p2 }
  0x3c   : > { %2629 = shalt.err (!%p2626_p11)
}
  0x3d   : > { %s3771_s3 = sld [smem:[#allocation36_spill]]  ;;  %s38_s23 = sadd.s32 1, %s2822_s28 }
  0x3e   : > { %s41_s16 = sadd.s32 1, %s2826_s29  ;;  %p39_p10 = scmp.ge.s32.totalorder %s38_s23, 2 }
  0x3f   : > { %s45_s8 = sadd.s32 1, %s2830_s30  ;;  %s54_s10 = sadd.s32 1, %s2806_s25 }
  0x40   : > { %p61_p3 = scmp.ne.s32.totalorder %s2806_s25, %s2802_s24  ;;  %s3819_s23 = smov (%p39_p10, %s38_s23), 0 }
  0x41   : > { %3772 = sst [smem:[#allocation31_spill]] %s3819_s23  ;;  %s3821_s16 = smov (!%p39_p10, %s41_s16), %s2826_s29 }
  0x42   : > { %p3773_p5 = scmp.eq.s32.totalorder %s2834_s6, 0  ;;  %s82_s15 = sadd.s32 1, %s2794_s22 }
  0x43   : > { %2345 = dma.hbm_to_vmem [thread:$0]  (!%p2992_p4), %s3771_s3, 512, %s223_s12, [#allocation14], %s3732_s19, %s3732_s19, %s3734_s20  }
  0x44   : > { %p3040_p0 = por %p3773_p5, %p61_p3  ;;  %s78_s12 = ssub.s32 %s2822_s28, %s3819_s23 }
  0x45   : > { %p43_p4 = scmp.ge.s32.totalorder %s3821_s16, 2  ;;  %p3775_p2 = scmp.eq.s32.totalorder %s2949_s7, 7 }
  0x46   : > { %s239_s19 = sand.u32 1, %s2806_s25   ;;  %s1891_s3 = sshll.u32 %s2830_s30, 3 }
  0x47   : > { %p3049_p7 = por %p3775_p2, %p61_p3  ;;  %s3823_s16 = smov (%p43_p4, %s3821_s16), 0 }
  0x48   : > { %3778 = sst [smem:[#allocation33_spill]] %s3823_s16  ;;  %s3825_s8 = smov (!%p43_p4, %s45_s8), %s2830_s30 }
  0x49   : > { %s3776_s18 = scalar_select %p3049_p7, 1, 0 }
  0x4a   : > { %s50_s20 = ssub.s32 %s2826_s29, %s3823_s16  ;;  %p47_p8 = scmp.ge.s32.totalorder %s3825_s8, 2 }
  0x4b   : > { %3777 = sst [smem:[#allocation32_spill]] %s3776_s18  ;;  %s1890_s2 = sshll.u32 %s239_s19, 5 }
  0x4c   : > { %s3827_s8 = smov (%p47_p8, %s3825_s8), 0  ;;  %s248_s23 = sadd.s32 %s2826_s29, %s1891_s3 }
  0x4d   : > { %s243_s5 = scalar_lea.vmem [#allocation7], %s1890_s2  ;;  %s49_s26 = ssub.s32 %s2830_s30, %s3827_s8 }
  0x4e   : > { %s251_s18 = sshll.u32 %s243_s5, 4  ;;  %s1892_s27 = sshll.u32 %s248_s23, 7  ;;  %s252_s18 = int_to_ptr.vmem [resolvable:$true] %s251_s18 }
  0x4f   : > { %s51_s4 = sor.u32 %s50_s20, %s49_s26  ;;  %s79_s11 = sor.u32 %s78_s12, %s49_s26 }
  0x50   : > { %p52_p12 = scmp.eq.s32.totalorder %s51_s4, 0  ;;  %p80_p11 = scmp.eq.s32.totalorder %s79_s11, 0 }
  0x51   : > { %s3779_s0 = sld [smem:[#allocation34_spill]]  ;;  %p3078_p10 = pnand %p2359_p1, %p3040_p0 }
  0x52   : > { %s3069_s9 = scalar_select %p52_p12, %s2806_s25, %s54_s10  }
  0x53   : > { %s3072_s24 = scalar_select %p80_p11, %s2794_s22, %s82_s15  }
  0x54   : > { %s270_s5 = sadd.s32 %s2822_s28, %s1891_s3  ;;  %s240_s4 = scalar_lea.sflag [#allocation8], %s239_s19 }
  0x55   : > { %s1895_s26 = sshll.u32 %s270_s5, 7  ;;  %p2632_p3 = pneg %p3078_p10 }
  0x56   : > { %s2643_s11 = scalar_lea.vmem %s252_s18, 512  ;;  %s2840_s21 = smov [#allocation7]  }
  0x57   : > { %s250_s7 = scalar_lea.hbm %s3779_s0, %s1892_s27  ;;  %p2644_p5 = scmp.ne.s32.totalorder %s252_s18, %s2643_s11 }
  0x58   : > { %s2648_s27 = sshll.u32 %s2840_s21, 4  ;;  %s2649_s27 = int_to_ptr.vmem [resolvable:$false] %s2648_s27 }
  0x59   : > { %p2646_p4 = pnand %p2644_p5, %p2632_p3  ;;  %s2650_s20 = scalar_lea.vmem %s2649_s27, 1024 }
  0x5a   : > { %p2651_p8 = scmp.lt.s32.totalorder %s252_s18, %s2649_s27  ;;  %p2652_p12 = scmp.lt.s32.totalorder %s2650_s20, %s2643_s11 }
  0x5b   : > { %p2647_p2 = pneg %p2646_p4 }
  0x5c   : > { %p2653_p1 = por %p2652_p12, %p2651_p8 }
  0x5e   : > { %p2654_p0 = pnand %p2653_p1, %p2647_p2 }
  0x60   : > { %2657 = shalt.err (!%p2654_p0)
}
  0x61   : > { %s2841_s23 = smov 256   ;;  %s3781_s3 = smov 8  }
  0x62   : > { %s3782_s19 = smov 128   ;;  %s261_s16 = sand.u32 1, %s2834_s6  }
  0x63   : > { %2349 = dma.hbm_to_vmem [thread:$0]  (!%p3078_p10), %s250_s7, 512, %s252_s18, %s240_s4, %s2841_s23, %s3782_s19, %s3781_s3  }
  0x64   : > { %s263_s10 = sand.u32 1, %s2794_s22   ;;  %s272_s15 = scalar_lea.hbm %s3722_s1, %s1895_s26 }
  0x65   : > { %s1893_s5 = sshll.u32 %s263_s10, 5  ;;  %s262_s27 = scalar_lea.sflag [#allocation11], %s261_s16 }
  0x66   : > { %s265_s11 = scalar_lea.vmem [#allocation10], %s1893_s5  ;;  %p2660_p11 = pneg %p3001_p9 }
  0x67   : > { %s273_s21 = sshll.u32 %s265_s11, 4  ;;  %s2842_s20 = smov [#allocation10]   ;;  %s274_s21 = int_to_ptr.vmem [resolvable:$true] %s273_s21 }
  0x68   : > { %s2671_s2 = scalar_lea.vmem %s274_s21, 512  ;;  %s2676_s0 = sshll.u32 %s2842_s20, 4  ;;  %s2677_s0 = int_to_ptr.vmem [resolvable:$false] %s2676_s0 }
  0x69   : > { %p2672_p3 = scmp.ne.s32.totalorder %s274_s21, %s2671_s2  ;;  %s2678_s7 = scalar_lea.vmem %s2677_s0, 1024 }
  0x6a   : > { %p2679_p10 = scmp.lt.s32.totalorder %s274_s21, %s2677_s0  ;;  %p2680_p2 = scmp.lt.s32.totalorder %s2678_s7, %s2671_s2 }
  0x6b   : > { %p2674_p5 = pnand %p2672_p3, %p2660_p11 }
  0x6c   : > { %p2681_p8 = por %p2680_p2, %p2679_p10 }
  0x6d   : > { %p2675_p4 = pneg %p2674_p5 }
  0x6f   : > { %p2682_p12 = pnand %p2681_p8, %p2675_p4 }
  0x71   : > { %2685 = shalt.err (!%p2682_p12)
}
  0x72   : > { %2352 = dma.hbm_to_vmem [thread:$0]  (!%p3001_p9), %s272_s15, 512, %s274_s21, %s262_s27, %s2841_s23, %s3782_s19, %s3781_s3  }
  0x73   : > { %285 = sbr.rel (%p2984_p13) target bundleno = 1628 (0x65c), region = 40  ;;  %s3783_s18 = sld [smem:[#allocation23_spill]] (!%p2984_p13) }
  0x79   : > { %s3103_s4 = sand.u32 1, %s3783_s18  }
  0x7a   : > { %s1897_s16 = sshll.u32 %s3103_s4, 5  ;;  %s288_s0 = scalar_lea.sflag [#allocation8], %s3103_s4 }
  0x7b   : > { %s3107_s10 = scalar_lea.vmem [#allocation7], %s1897_s16 }
  0x7c   : > { %2765 = dma.done.wait (%p2962_p6), %s288_s0, 512  }
  0x7d   : > { %2767 = vsyncadd (%p2962_p6), %s288_s0, 4294966784  ;;  %s3785_s17 = sld [smem:[#allocation27_spill]] }
  0x7e   : > { %s3786_s23 = sld [smem:[#allocation21_spill]] }
  0x7f   : > { %s3787_s3 = sld [smem:[#allocation29_spill]] }
  0x83   : > { %s296_s13 = sand.u32 1, %s3785_s17  }
  0x84   : > { %s298_s19 = sand.u32 1, %s3786_s23   ;;  %s297_s12 = scalar_lea.sflag [#allocation11], %s296_s13 }
  0x85   : > { %s1898_s14 = sshll.u32 %s298_s19, 5  ;;  %p3788_p13 = scmp.ne.s32.totalorder %s3787_s3, 0 }
  0x86   : > { %s3115_s15 = scalar_lea.vmem [#allocation10], %s1898_s14 }
  0x87   : > { %2769 = dma.done.wait (%p3788_p13), %s297_s12, 512  }
  0x88   : > { %2771 = vsyncadd (%p3788_p13), %s297_s12, 4294966784  ;;  %p3789_p9 = scmp.eq.s32.totalorder %s3785_s17, 0 }
  0x8a   : > { %2773 = dma.done.wait (%p3789_p9), [#allocation11], 512   ;;  %p3790_p1 = pmov %p3789_p9 }
  0x8c   : > { %2775 = vsyncadd (%p3790_p1), [#allocation11], 4294966784  ;;  %p3791_p6 = pmov %p3790_p1 }
  0x8d   : > { %p3792_p0 = pmov %p3790_p1 }
  0x8e   : > { %2777 = dma.done.wait (%p3791_p6), [#allocation14], 512  }
  0x8f   : > { %2779 = vsyncadd (%p3792_p0), [#allocation14], 4294966784  ;;  %s3129_s5 = scalar_lea.vmem [#allocation15], %s1897_s16  ;;  %s3793_s11 = sld [smem:[#allocation24_spill]] }
  0x95   : > { %p1902_p11 = scmp.ne.s32.totalorder %s3793_s11, 0 }
  0x97   : > { %343 = sbr.rel (%p1902_p11) target bundleno = 538 (0x21a), region = 60 }
  0x9c   : > { %v344_v0 = vld [vmem:[%s3107_s10] sm:$0xff]  ;;  %v383_v1 = vld [vmem:[#allocation12 + $0x18] sm:$0xff]  ;;  %v2843_v2 = vmov 0.0   ;;  %v382_v3 = vld [vmem:[#allocation12 + $0x10] sm:$0xff]  ;;  %vm384_vm0 = vcmask 261120   ;;  %vm594_vm1 = vcmask 7168  }
  0x9d   : > { %348 = vxpose.xlu0.b32.start [1/4] (short) %v344_v0, 128  ;;  %627 = vst [vmem:[#allocation5 + $0x10] sm:$0xff] %v2843_v2  ;;  %628 = vst [vmem:[#allocation5] sm:$0xff] %v2843_v2  ;;  %v345_v4 = vld [vmem:[%s3107_s10 + $0x8] sm:$0xff]  ;;  %2093 = vmatprep.subr.mxu0 %v383_v1  ;;  %v380_v6 = vld [vmem:[#allocation12] sm:$0xff]  ;;  %v2844_v25 = vmov -inf  }
  0x9e   : > { %629 = vst [vmem:[#allocation5 + $0x18] sm:$0xff] %v2843_v2  ;;  %630 = vst [vmem:[#allocation5 + $0x8] sm:$0xff] %v2843_v2  ;;  %2285 = vmatprep.subr.mxu1 %v383_v1  ;;  %2094 = vmatpush3.msra.mxu0 %v383_v1  ;;  %v381_v5 = vld [vmem:[#allocation12 + $0x8] sm:$0xff]  ;;  %v346_v7 = vld [vmem:[%s3107_s10 + $0x10] sm:$0xff] }
  0x9f   : > { %2289 = vmatpush3.msra.mxu1 %v383_v1  ;;  %2095 = vmatprep.subr.mxu0 %v382_v3  ;;  %v347_v8 = vld [vmem:[%s3107_s10 + $0x18] sm:$0xff]  ;;  %595 = vst.msk [vmem:[#allocation3] sm:$0xff] %vm594_vm1, %v2844_v25  ;;  %596 = vst.msk [vmem:[#allocation3 + $0x8] sm:$0xff] %vm594_vm1, %v2844_v25 }
  0xa0   : > { %2286 = vmatprep.subr.mxu1 %v382_v3  ;;  %2096 = vmatpush3.msra.mxu0 %v382_v3  ;;  %597 = vst.msk [vmem:[#allocation3 + $0x10] sm:$0xff] %vm594_vm1, %v2844_v25  ;;  %598 = vst.msk [vmem:[#allocation3 + $0x18] sm:$0xff] %vm594_vm1, %v2844_v25 }
  0xa1   : > { %349 = vxpose.xlu0.b32.cont [2/4] (short) %v345_v4, 128  ;;  %2097 = vmatprep.subr.mxu0 %v381_v5  ;;  %599 = vst.msk [vmem:[#allocation3 + $0x20] sm:$0xff] %vm594_vm1, %v2844_v25  ;;  %600 = vst.msk [vmem:[#allocation3 + $0x28] sm:$0xff] %vm594_vm1, %v2844_v25 }
  0xa2   : > { %2290 = vmatpush3.msra.mxu1 %v382_v3  ;;  %2098 = vmatpush3.msra.mxu0 %v381_v5  ;;  %601 = vst.msk [vmem:[#allocation3 + $0x30] sm:$0xff] %vm594_vm1, %v2844_v25  ;;  %602 = vst.msk [vmem:[#allocation3 + $0x38] sm:$0xff] %vm594_vm1, %v2844_v25 }
  0xa3   : > { %2287 = vmatprep.subr.mxu1 %v381_v5  ;;  %2099 = vmatprep.subr.mxu0 %v380_v6  ;;  %603 = vst.msk [vmem:[#allocation3 + $0x40] sm:$0xff] %vm594_vm1, %v2844_v25  ;;  %604 = vst.msk [vmem:[#allocation3 + $0x48] sm:$0xff] %vm594_vm1, %v2844_v25 }
  0xa4   : > { %2291 = vmatpush3.msra.mxu1 %v381_v5  ;;  %2100 = vmatpush3.msra.mxu0 %v380_v6  ;;  %605 = vst.msk [vmem:[#allocation3 + $0x50] sm:$0xff] %vm594_vm1, %v2844_v25  ;;  %606 = vst.msk [vmem:[#allocation3 + $0x58] sm:$0xff] %vm594_vm1, %v2844_v25 }
  0xa5   : > { %350 = vxpose.xlu0.b32.cont [3/4] (short) %v346_v7, 128  ;;  %2288 = vmatprep.subr.mxu1 %v380_v6  ;;  %607 = vst.msk [vmem:[#allocation3 + $0x60] sm:$0xff] %vm594_vm1, %v2844_v25  ;;  %608 = vst.msk [vmem:[#allocation3 + $0x68] sm:$0xff] %vm594_vm1, %v2844_v25 }
  0xa6   : > { %2292 = vmatpush3.msra.mxu1 %v380_v6  ;;  %609 = vst.msk [vmem:[#allocation3 + $0x70] sm:$0xff] %vm594_vm1, %v2844_v25  ;;  %610 = vst.msk [vmem:[#allocation3 + $0x78] sm:$0xff] %vm594_vm1, %v2844_v25 }
  0xa7   : > { %611 = vst.msk [vmem:[#allocation4] sm:$0xff] %vm594_vm1, %v2843_v2  ;;  %612 = vst.msk [vmem:[#allocation4 + $0x8] sm:$0xff] %vm594_vm1, %v2843_v2 }
  0xa8   : > { %613 = vst.msk [vmem:[#allocation4 + $0x10] sm:$0xff] %vm594_vm1, %v2843_v2  ;;  %614 = vst.msk [vmem:[#allocation4 + $0x18] sm:$0xff] %vm594_vm1, %v2843_v2 }
  0xa9   : > { %351 = vxpose.xlu0.b32.end [4/4] (short) %v347_v8, 128  ;;  %615 = vst.msk [vmem:[#allocation4 + $0x20] sm:$0xff] %vm594_vm1, %v2843_v2  ;;  %616 = vst.msk [vmem:[#allocation4 + $0x28] sm:$0xff] %vm594_vm1, %v2843_v2 }
  0xaa   : > { %617 = vst.msk [vmem:[#allocation4 + $0x30] sm:$0xff] %vm594_vm1, %v2843_v2  ;;  %618 = vst.msk [vmem:[#allocation4 + $0x38] sm:$0xff] %vm594_vm1, %v2843_v2 }
  0xab   : > { %619 = vst.msk [vmem:[#allocation4 + $0x40] sm:$0xff] %vm594_vm1, %v2843_v2  ;;  %620 = vst.msk [vmem:[#allocation4 + $0x48] sm:$0xff] %vm594_vm1, %v2843_v2 }
  0xac   : > { %621 = vst.msk [vmem:[#allocation4 + $0x50] sm:$0xff] %vm594_vm1, %v2843_v2  ;;  %622 = vst.msk [vmem:[#allocation4 + $0x58] sm:$0xff] %vm594_vm1, %v2843_v2 }
  0xad   : > { %623 = vst.msk [vmem:[#allocation4 + $0x60] sm:$0xff] %vm594_vm1, %v2843_v2  ;;  %624 = vst.msk [vmem:[#allocation4 + $0x68] sm:$0xff] %vm594_vm1, %v2843_v2 }
  0xae   : > { %625 = vst.msk [vmem:[#allocation4 + $0x70] sm:$0xff] %vm594_vm1, %v2843_v2  ;;  %626 = vst.msk [vmem:[#allocation4 + $0x78] sm:$0xff] %vm594_vm1, %v2843_v2 }
 0x119   : > { %v364_v9 = vpop.trf.xlu0 }
 0x11a   : > { %2101 = vmatprep.mubr.msk.f32.mxu0 %vm384_vm0, %v364_v9 }
 0x11d   : > { %v365_v10 = vpop.trf.xlu0 }
 0x11e   : > { %2102 = vmatmul.mubr.msk.f32.vlgmr.msra.gmra.mxu0 %vm384_vm0, %v365_v10 }
 0x121   : > { %v366_v11 = vpop.trf.xlu0 }
 0x122   : > { %2104 = vmatprep.mubr.msk.f32.mxu0 %vm384_vm0, %v366_v11 }
 0x125   : > { %v367_v12 = vpop.trf.xlu0 }
 0x126   : > { %2105 = vmatmul.mubr.msk.f32.gmra.mxu0 %vm384_vm0, %v367_v12 }
 0x129   : > { %v368_v13 = vpop.trf.xlu0 }
 0x12a   : > { %2107 = vmatprep.mubr.msk.f32.mxu0 %vm384_vm0, %v368_v13 }
 0x12d   : > { %v369_v14 = vpop.trf.xlu0 }
 0x12e   : > { %2108 = vmatmul.mubr.msk.f32.gmra.mxu0 %vm384_vm0, %v369_v14 }
 0x131   : > { %v370_v15 = vpop.trf.xlu0 }
 0x132   : > { %2110 = vmatprep.mubr.msk.f32.mxu0 %vm384_vm0, %v370_v15 }
 0x135   : > { %v371_v16 = vpop.trf.xlu0 }
 0x136   : > { %2111 = vmatmul.mubr.msk.f32.gmra.mxu0 %vm384_vm0, %v371_v16 }
 0x139   : > { %v372_v17 = vpop.trf.xlu0 }
 0x13a   : > { %2113 = vmatprep.mubr.msk.f32.mxu1 %vm384_vm0, %v372_v17 }
 0x13d   : > { %v373_v18 = vpop.trf.xlu0 }
 0x13e   : > { %2114 = vmatmul.mubr.msk.f32.vlgmr.msra.gmra.mxu1 %vm384_vm0, %v373_v18 }
 0x141   : > { %v374_v19 = vpop.trf.xlu0 }
 0x142   : > { %2116 = vmatprep.mubr.msk.f32.mxu1 %vm384_vm0, %v374_v19 }
 0x145   : > { %v375_v20 = vpop.trf.xlu0 }
 0x146   : > { %2117 = vmatmul.mubr.msk.f32.gmra.mxu1 %vm384_vm0, %v375_v20 }
 0x149   : > { %v376_v21 = vpop.trf.xlu0 }
 0x14a   : > { %2119 = vmatprep.mubr.msk.f32.mxu1 %vm384_vm0, %v376_v21 }
 0x14d   : > { %v377_v22 = vpop.trf.xlu0 }
 0x14e   : > { %2120 = vmatmul.mubr.msk.f32.gmra.mxu1 %vm384_vm0, %v377_v22 }
 0x151   : > { %v378_v23 = vpop.trf.xlu0 }
 0x152   : > { %2122 = vmatprep.mubr.msk.f32.mxu1 %vm384_vm0, %v378_v23 }
 0x155   : > { %v379_v24 = vpop.trf.xlu0 }
 0x156   : > { %2123 = vmatmul.mubr.msk.f32.gmra.mxu1 %vm384_vm0, %v379_v24 }
 0x1de   : > { %v2103_v26 = vpop.f32.mrf.mxu0 }
 0x1df   : > { %579 = vst.msk [vmem:[#allocation2 + $0x8] sm:$0xff] %vm384_vm0, %v2103_v26 }
 0x1e0   : > { %v499_v27 = vpop.f32.mrf.mxu0 }
 0x1e1   : > { %578 = vst.msk [vmem:[#allocation2] sm:$0xff] %vm384_vm0, %v499_v27 }
 0x1e6   : > { %v2106_v28 = vpop.f32.mrf.mxu0 }
 0x1e7   : > { %581 = vst.msk [vmem:[#allocation2 + $0x18] sm:$0xff] %vm384_vm0, %v2106_v28 }
 0x1e8   : > { %v509_v29 = vpop.f32.mrf.mxu0 }
 0x1e9   : > { %580 = vst.msk [vmem:[#allocation2 + $0x10] sm:$0xff] %vm384_vm0, %v509_v29 }
 0x1ee   : > { %v2109_v30 = vpop.f32.mrf.mxu0 }
 0x1ef   : > { %583 = vst.msk [vmem:[#allocation2 + $0x28] sm:$0xff] %vm384_vm0, %v2109_v30 }
 0x1f0   : > { %v519_v31 = vpop.f32.mrf.mxu0 }
 0x1f1   : > { %582 = vst.msk [vmem:[#allocation2 + $0x20] sm:$0xff] %vm384_vm0, %v519_v31 }
 0x1f6   : > { %v2112_v32 = vpop.f32.mrf.mxu0 }
 0x1f7   : > { %585 = vst.msk [vmem:[#allocation2 + $0x38] sm:$0xff] %vm384_vm0, %v2112_v32 }
 0x1f8   : > { %v529_v33 = vpop.f32.mrf.mxu0 }
 0x1f9   : > { %584 = vst.msk [vmem:[#allocation2 + $0x30] sm:$0xff] %vm384_vm0, %v529_v33 }
 0x1fe   : > { %v2115_v34 = vpop.f32.mrf.mxu1 }
 0x1ff   : > { %587 = vst.msk [vmem:[#allocation2 + $0x48] sm:$0xff] %vm384_vm0, %v2115_v34 }
 0x200   : > { %v539_v35 = vpop.f32.mrf.mxu1 }
 0x201   : > { %586 = vst.msk [vmem:[#allocation2 + $0x40] sm:$0xff] %vm384_vm0, %v539_v35 }
 0x206   : > { %v2118_v36 = vpop.f32.mrf.mxu1 }
 0x207   : > { %589 = vst.msk [vmem:[#allocation2 + $0x58] sm:$0xff] %vm384_vm0, %v2118_v36 }
 0x208   : > { %v549_v37 = vpop.f32.mrf.mxu1 }
 0x209   : > { %588 = vst.msk [vmem:[#allocation2 + $0x50] sm:$0xff] %vm384_vm0, %v549_v37 }
 0x20e   : > { %v2121_v38 = vpop.f32.mrf.mxu1 }
 0x20f   : > { %591 = vst.msk [vmem:[#allocation2 + $0x68] sm:$0xff] %vm384_vm0, %v2121_v38 }
 0x210   : > { %v559_v39 = vpop.f32.mrf.mxu1 }
 0x211   : > { %590 = vst.msk [vmem:[#allocation2 + $0x60] sm:$0xff] %vm384_vm0, %v559_v39 }
 0x216   : > { %v2124_v40 = vpop.f32.mrf.mxu1 }
 0x217   : > { %593 = vst.msk [vmem:[#allocation2 + $0x78] sm:$0xff] %vm384_vm0, %v2124_v40 }
 0x218   : > { %v569_v41 = vpop.f32.mrf.mxu1 }
 0x219   : > { %592 = vst.msk [vmem:[#allocation2 + $0x70] sm:$0xff] %vm384_vm0, %v569_v41 }
 0x21a PF: > { %v634_v42 = vld [vmem:[%s3115_s15 + $0x18] sm:$0xff]  ;;  %v633_v43 = vld [vmem:[%s3115_s15 + $0x10] sm:$0xff]  ;;  %vm639_vm2 = vcmask 261120   ;;  %v737_v44 = vld [vmem:[#allocation2] sm:$0xff]  ;;  %v2845_v14 = vmov 0   ;;  %vm1266_vm3 = vcmask 7168  }
 0x21b   : > { %2139 = vmatprep.subr.mxu1 %v634_v42  ;;  %2125 = vmatprep.subr.mxu0 %v634_v42  ;;  %v632_v45 = vld [vmem:[%s3115_s15 + $0x8] sm:$0xff]  ;;  %v631_v46 = vld [vmem:[%s3115_s15] sm:$0xff]  ;;  %v739_v48 = vld [vmem:[#allocation2 + $0x10] sm:$0xff]  ;;  %s3794_s21 = sld [smem:[#allocation24_spill]] }
 0x21c   : > { %2140 = vmatpush3.msra.mxu1 %v634_v42  ;;  %2147 = vmatprep.mubr.msk.f32.mxu1 %vm639_vm2, %v737_v44  ;;  %v738_v47 = vld [vmem:[#allocation2 + $0x8] sm:$0xff]  ;;  %v740_v49 = vld [vmem:[#allocation2 + $0x18] sm:$0xff]  ;;  %v741_v50 = vld [vmem:[#allocation2 + $0x20] sm:$0xff] }
 0x21d   : > { %2141 = vmatprep.subr.mxu1 %v633_v43  ;;  %2126 = vmatpush3.msra.mxu0 %v634_v42  ;;  %v742_v51 = vld [vmem:[#allocation2 + $0x28] sm:$0xff]  ;;  %v743_v52 = vld [vmem:[#allocation2 + $0x30] sm:$0xff]  ;;  %v744_v53 = vld [vmem:[#allocation2 + $0x38] sm:$0xff] }
 0x21e   : > { %2142 = vmatpush3.msra.mxu1 %v633_v43  ;;  %2127 = vmatprep.subr.mxu0 %v633_v43  ;;  %v745_v54 = vld [vmem:[#allocation2 + $0x40] sm:$0xff]  ;;  %v746_v55 = vld [vmem:[#allocation2 + $0x48] sm:$0xff]  ;;  %v747_v56 = vld [vmem:[#allocation2 + $0x50] sm:$0xff] }
 0x21f   : > { %2143 = vmatprep.subr.mxu1 %v632_v45  ;;  %2128 = vmatpush3.msra.mxu0 %v633_v43  ;;  %v748_v57 = vld [vmem:[#allocation2 + $0x58] sm:$0xff]  ;;  %v749_v58 = vld [vmem:[#allocation2 + $0x60] sm:$0xff]  ;;  %v750_v59 = vld [vmem:[#allocation2 + $0x68] sm:$0xff] }
 0x220   : > { %2144 = vmatpush3.msra.mxu1 %v632_v45  ;;  %2129 = vmatprep.subr.mxu0 %v632_v45  ;;  %v751_v60 = vld [vmem:[#allocation2 + $0x70] sm:$0xff]  ;;  %v752_v61 = vld [vmem:[#allocation2 + $0x78] sm:$0xff]  ;;  %v635_v15 = vld [vmem:[#allocation13] sm:$0xff] }
 0x221   : > { %2145 = vmatprep.subr.mxu1 %v631_v46  ;;  %2130 = vmatpush3.msra.mxu0 %v632_v45  ;;  %v636_v16 = vld [vmem:[#allocation13 + $0x8] sm:$0xff]  ;;  %v637_v17 = vld [vmem:[#allocation13 + $0x10] sm:$0xff]  ;;  %v638_v18 = vld [vmem:[#allocation13 + $0x18] sm:$0xff]  ;;  %p1959_p3 = scmp.ne.s32.totalorder %s3794_s21, 1 }
 0x222   : > { %2146 = vmatpush3.msra.mxu1 %v631_v46  ;;  %2131 = vmatprep.subr.mxu0 %v631_v46  ;;  %v959_v19 = vld [vmem:[#allocation3 + $0x68] sm:$0xff]  ;;  %v958_v22 = vld [vmem:[#allocation3 + $0x60] sm:$0xff]  ;;  %v961_v23 = vld [vmem:[#allocation3 + $0x78] sm:$0xff]  ;;  %s1713_s27 = sld [smem:[#allocation6]] (!%p1959_p3) }
 0x223   : > { %2148 = vmatmul.mubr.msk.f32.vlgmr.msra.gmra.mxu1 %vm639_vm2, %v738_v47  ;;  %2132 = vmatpush3.msra.mxu0 %v631_v46  ;;  %v3293_v28 = vld [vmem:[#allocation3 + $0x50] sm:$0xff]  ;;  %v3300_v37 = vld [vmem:[#allocation3 + $0x40] sm:$0xff]  ;;  %v957_v38 = vld [vmem:[#allocation3 + $0x58] sm:$0xff] }
 0x224   : > { %2150 = vmatprep.mubr.msk.f32.mxu1 %vm639_vm2, %v739_v48  ;;  %2480 = vset.pattern.permute.xlu0 %v2845_v14  ;;  %v960_v29 = vld [vmem:[#allocation3 + $0x70] sm:$0xff]  ;;  %v955_v48 = vld [vmem:[#allocation3 + $0x48] sm:$0xff] }
 0x225   : > { %2481 = vset.pattern.permute.xlu1 %v2845_v14  ;;  %2133 = vmatprep.mubr.msk.f32.mxu0 %vm639_vm2, %v635_v15  ;;  %v3308_v47 = vld [vmem:[#allocation3 + $0x30] sm:$0xff] }
 0x226   : > { %2134 = vmatmul.mubr.msk.f32.vlgmr.msra.gmra.mxu0 %vm639_vm2, %v636_v16  ;;  %v3330_v15 = vld [vmem:[#allocation3 + $0x10] sm:$0xff]  ;;  %v3332_v16 = vld [vmem:[#allocation3 + $0x28] sm:$0xff] }
 0x227   : > { %2151 = vmatmul.mubr.msk.f32.gmra.mxu1 %vm639_vm2, %v740_v49  ;;  %2136 = vmatprep.mubr.msk.f32.mxu0 %vm639_vm2, %v637_v17 }
 0x228   : > { %2153 = vmatprep.mubr.msk.f32.mxu1 %vm639_vm2, %v741_v50 }
 0x22a   : > { %2137 = vmatmul.mubr.msk.f32.gmra.mxu0 %vm639_vm2, %v638_v18 }
 0x22b   : > { %2154 = vmatmul.mubr.msk.f32.gmra.mxu1 %vm639_vm2, %v742_v51 }
 0x22c   : > { %2156 = vmatprep.mubr.msk.f32.mxu1 %vm639_vm2, %v743_v52 }
 0x22f   : > { %2157 = vmatmul.mubr.msk.f32.gmra.mxu1 %vm639_vm2, %v744_v53 }
 0x230   : > { %2159 = vmatprep.mubr.msk.f32.mxu1 %vm639_vm2, %v745_v54 }
 0x233   : > { %2160 = vmatmul.mubr.msk.f32.gmra.mxu1 %vm639_vm2, %v746_v55  ;;  %v3316_v55 = vld [vmem:[#allocation3 + $0x20] sm:$0xff] }
 0x234   : > { %2162 = vmatprep.mubr.msk.f32.mxu1 %vm639_vm2, %v747_v56  ;;  %v3318_v56 = vld [vmem:[#allocation3 + $0x38] sm:$0xff] }
 0x237   : > { %2163 = vmatmul.mubr.msk.f32.gmra.mxu1 %vm639_vm2, %v748_v57 }
 0x238   : > { %2165 = vmatprep.mubr.msk.f32.mxu1 %vm639_vm2, %v749_v58 }
 0x23b   : > { %2166 = vmatmul.mubr.msk.f32.gmra.mxu1 %vm639_vm2, %v750_v59 }
 0x23c   : > { %2168 = vmatprep.mubr.msk.f32.mxu1 %vm639_vm2, %v751_v60 }
 0x23f   : > { %2169 = vmatmul.mubr.msk.f32.gmra.mxu1 %vm639_vm2, %v752_v61 }
 0x2e3   : > { %v3240_v62 = vpop.f32.mrf.mxu1 }
 0x2e5   : > { %v3242_v63 = vpop.f32.mrf.mxu1 }
 0x2e7   : > { %v3244_v0 = vpop.f32.mrf.mxu1 }
 0x2e9   : > { %v3246_v1 = vpop.f32.mrf.mxu1 }
 0x2eb   : > { %v3248_v2 = vpop.f32.mrf.mxu1 }
 0x2ed   : > { %v3250_v3 = vpop.f32.mrf.mxu1 }
 0x2ef   : > { %v3252_v4 = vpop.f32.mrf.mxu1 }
 0x2f1   : > { %v3254_v5 = vpop.f32.mrf.mxu1 }
 0x2f3   : > { %v3256_v6 = vpop.f32.mrf.mxu1 }
 0x2f5   : > { %v3258_v7 = vpop.f32.mrf.mxu1 }
 0x2f7   : > { %v3260_v8 = vpop.f32.mrf.mxu1 }
 0x2f9   : > { %v3262_v9 = vpop.f32.mrf.mxu1 }
 0x2fb   : > { %v3264_v10 = vpop.f32.mrf.mxu1 }
 0x2fc   : > { %988 = vmax.xlane.f32.xlu1 %v3264_v10 }
 0x2fd   : > { %v3267_v11 = vpop.f32.mrf.mxu1 }
 0x2ff   : > { %v3269_v12 = vpop.f32.mrf.mxu1 }
 0x300   : > { %986 = vmax.xlane.f32.xlu1 %v3267_v11  ;;  %992 = vmax.xlane.f32.xlu0 %v3269_v12 }
 0x301   : > { %v3273_v13 = vpop.f32.mrf.mxu1 }
 0x304   : > { %982 = vmax.xlane.f32.xlu1 %v3262_v9  ;;  %990 = vmax.xlane.f32.xlu0 %v3273_v13 }
 0x308   : > { %978 = vmax.xlane.f32.xlu1 %v3258_v7  ;;  %984 = vmax.xlane.f32.xlu0 %v3260_v8 }
 0x30c   : > { %974 = vmax.xlane.f32.xlu1 %v3254_v5  ;;  %980 = vmax.xlane.f32.xlu0 %v3256_v6 }
 0x310   : > { %970 = vmax.xlane.f32.xlu1 %v3250_v3  ;;  %976 = vmax.xlane.f32.xlu0 %v3252_v4 }
 0x314   : > { %966 = vmax.xlane.f32.xlu1 %v3246_v1  ;;  %972 = vmax.xlane.f32.xlu0 %v3248_v2 }
 0x318   : > { %962 = vmax.xlane.f32.xlu1 %v3242_v63  ;;  %968 = vmax.xlane.f32.xlu0 %v3244_v0 }
 0x31c   : > { %964 = vmax.xlane.f32.xlu0 %v3240_v62 }
 0x385   : > { %v989_v20 = vpop.xlane.xlu1 %988 }
 0x386   : > { %v1007_v21 = vmax.f32 %v959_v19, %v989_v20 }
 0x388   : > { %1296 = vst.msk [vmem:[#allocation3 + $0x68] sm:$0xff] %vm1266_vm3, %v1007_v21  ;;  %v1023_v36 = vsub.f32 %v959_v19, %v1007_v21 }
 0x389   : > { %v987_v24 = vpop.xlane.xlu1 %986  ;;  %v993_v25 = vpop.xlane.xlu0 %992 }
 0x38a   : > { %v1006_v26 = vmax.f32 %v958_v22, %v987_v24  ;;  %v1009_v27 = vmax.f32 %v961_v23, %v993_v25  ;;  %v1052_v45 = vmul.f32 1.442695, %v1023_v36  ;;  %v3346_v24 = vld [vmem:[#allocation3] sm:$0xff]  ;;  %v3348_v25 = vld [vmem:[#allocation3 + $0x18] sm:$0xff] }
 0x38c   : > { %1295 = vst.msk [vmem:[#allocation3 + $0x60] sm:$0xff] %vm1266_vm3, %v1006_v26  ;;  %v1025_v30 = vsub.f32 %v961_v23, %v1009_v27  ;;  %1298 = vst.msk [vmem:[#allocation3 + $0x78] sm:$0xff] %vm1266_vm3, %v1009_v27  ;;  %1135 = vperm.xlu0 %2480, %v1009_v27   ;;  %v1022_v46 = vsub.f32 %v958_v22, %v1006_v26 }
 0x38d   : > { %v983_v31 = vpop.xlane.xlu1 %982  ;;  %v991_v32 = vpop.xlane.xlu0 %990 }
 0x38e   : > { %v1056_v33 = vmul.f32 1.442695, %v1025_v30  ;;  %v3298_v34 = vmax.f32 %v3293_v28, %v983_v31  ;;  %v1008_v35 = vmax.f32 %v960_v29, %v991_v32  ;;  %v1050_v53 = vmul.f32 1.442695, %v1022_v46 }
 0x390   : > { %1293 = vst.msk [vmem:[#allocation3 + $0x50] sm:$0xff] %vm1266_vm3, %v3298_v34  ;;  %v1024_v39 = vsub.f32 %v960_v29, %v1008_v35  ;;  %1297 = vst.msk [vmem:[#allocation3 + $0x70] sm:$0xff] %vm1266_vm3, %v1008_v35  ;;  %1130 = vperm.xlu1 %2481, %v1008_v35   ;;  %2482 = vpow2.f32 %v1056_v33  ;;  %v1020_v61 = vsub.f32 %v3293_v28, %v3298_v34  ;;  %v947_v33 = vld [vmem:[#allocation3 + $0x8] sm:$0xff] }
 0x391   : > { %v979_v40 = vpop.xlane.xlu1 %978  ;;  %v985_v41 = vpop.xlane.xlu0 %984 }
 0x392   : > { %v1054_v42 = vmul.f32 1.442695, %v1024_v39  ;;  %v3306_v43 = vmax.f32 %v3300_v37, %v979_v40  ;;  %v1005_v44 = vmax.f32 %v957_v38, %v985_v41  ;;  %v1046_v22 = vmul.f32 1.442695, %v1020_v61 }
 0x394   : > { %1291 = vst.msk [vmem:[#allocation3 + $0x40] sm:$0xff] %vm1266_vm3, %v3306_v43  ;;  %1294 = vst.msk [vmem:[#allocation3 + $0x58] sm:$0xff] %vm1266_vm3, %v1005_v44  ;;  %1125 = vperm.xlu1 %2481, %v1007_v21   ;;  %2484 = vpow2.f32 %v1054_v42  ;;  %v1021_v54 = vsub.f32 %v957_v38, %v1005_v44  ;;  %v1018_v31 = vsub.f32 %v3300_v37, %v3306_v43 }
 0x395   : > { %v975_v49 = vpop.xlane.xlu1 %974  ;;  %v981_v50 = vpop.xlane.xlu0 %980  ;;  %2486 = vpow2.f32 %v1052_v45 }
 0x396   : > { %v3314_v51 = vmax.f32 %v3308_v47, %v975_v49  ;;  %v1003_v52 = vmax.f32 %v955_v48, %v981_v50  ;;  %2488 = vpow2.f32 %v1050_v53  ;;  %v1048_v14 = vmul.f32 1.442695, %v1021_v54 }
 0x397   : > { %v1042_v37 = vmul.f32 1.442695, %v1018_v31 }
 0x398   : > { %1289 = vst.msk [vmem:[#allocation3 + $0x30] sm:$0xff] %vm1266_vm3, %v3314_v51  ;;  %1292 = vst.msk [vmem:[#allocation3 + $0x48] sm:$0xff] %vm1266_vm3, %v1003_v52  ;;  %1090 = vperm.xlu0 %2480, %v3314_v51   ;;  %1120 = vperm.xlu1 %2481, %v1006_v26   ;;  %2490 = vpow2.f32 %v1048_v14  ;;  %v1019_v23 = vsub.f32 %v955_v48, %v1003_v52  ;;  %v1016_v40 = vsub.f32 %v3308_v47, %v3314_v51 }
 0x399   : > { %v971_v57 = vpop.xlane.xlu1 %970  ;;  %v977_v58 = vpop.xlane.xlu0 %976  ;;  %2492 = vpow2.f32 %v1046_v22 }
 0x39a   : > { %v3325_v59 = vmax.f32 %v3316_v55, %v971_v57  ;;  %v1001_v60 = vmax.f32 %v3318_v56, %v977_v58  ;;  %v1044_v32 = vmul.f32 1.442695, %v1019_v23 }
 0x39c   : > { %1287 = vst.msk [vmem:[#allocation3 + $0x20] sm:$0xff] %vm1266_vm3, %v3325_v59  ;;  %1290 = vst.msk [vmem:[#allocation3 + $0x38] sm:$0xff] %vm1266_vm3, %v1001_v60  ;;  %1080 = vperm.xlu0 %2480, %v3325_v59   ;;  %1115 = vperm.xlu1 %2481, %v1005_v44   ;;  %2494 = vpow2.f32 %v1044_v32  ;;  %v1017_v38 = vsub.f32 %v3318_v56, %v1001_v60  ;;  %v1038_v44 = vmul.f32 1.442695, %v1016_v40 }
 0x39d   : > { %v967_v17 = vpop.xlane.xlu1 %966  ;;  %v973_v18 = vpop.xlane.xlu0 %972  ;;  %2496 = vpow2.f32 %v1042_v37  ;;  %v1014_v46 = vsub.f32 %v3316_v55, %v3325_v59 }
 0x39e   : > { %v3338_v19 = vpop.eup %2482  ;;  %v3341_v20 = vmax.f32 %v3330_v15, %v967_v17  ;;  %v999_v21 = vmax.f32 %v3332_v16, %v973_v18  ;;  %v1040_v41 = vmul.f32 1.442695, %v1017_v38  ;;  %v3462_v18 = vpop.f32.mrf.mxu0 }
 0x39f   : > { %2171 = vmatprep.subr.msk.mxu0 %vm1266_vm3, %v3338_v19  ;;  %v1034_v49 = vmul.f32 1.442695, %v1014_v46 }
 0x3a0   : > { %1285 = vst.msk [vmem:[#allocation3 + $0x10] sm:$0xff] %vm1266_vm3, %v3341_v20  ;;  %1288 = vst.msk [vmem:[#allocation3 + $0x28] sm:$0xff] %vm1266_vm3, %v999_v21  ;;  %2172 = vmatpush3.xpose.msk.msra.mxu0 %vm1266_vm3, %v3338_v19  ;;  %1070 = vperm.xlu0 %2480, %v3341_v20   ;;  %2498 = vpow2.f32 %v1040_v41  ;;  %v718_v22 = vpop.f32.mrf.mxu0 }
 0x3a1   : > { %1110 = vperm.xlu1 %2481, %v3298_v34   ;;  %v963_v26 = vpop.xlane.xlu1 %962  ;;  %v969_v27 = vpop.xlane.xlu0 %968  ;;  %2500 = vpow2.f32 %v1038_v44  ;;  %2241 = vmatprep.mubr.f32.mxu1 %v718_v22 }
 0x3a2   : > { %v3357_v28 = vpop.eup %2484  ;;  %v3360_v29 = vmax.f32 %v3346_v24, %v963_v26  ;;  %v997_v30 = vmax.f32 %v3348_v25, %v969_v27 }
 0x3a3   : > { %2173 = vmatprep.subr.msk.mxu0 %vm1266_vm3, %v3357_v28  ;;  %v3367_v35 = vpop.eup %2486 }
 0x3a4   : > { %1283 = vst.msk [vmem:[#allocation3] sm:$0xff] %vm1266_vm3, %v3360_v29  ;;  %1286 = vst.msk [vmem:[#allocation3 + $0x18] sm:$0xff] %vm1266_vm3, %v997_v30  ;;  %2174 = vmatpush3.xpose.msk.msra.mxu0 %vm1266_vm3, %v3357_v28  ;;  %1060 = vperm.xlu0 %2480, %v3360_v29   ;;  %v3378_v39 = vpop.eup %2488  ;;  %v1013_v50 = vsub.f32 %v3348_v25, %v997_v30  ;;  %v1010_v58 = vsub.f32 %v3346_v24, %v3360_v29 }
 0x3a5   : > { %1105 = vperm.xlu1 %2481, %v1003_v52   ;;  %2175 = vmatprep.subr.msk.mxu0 %vm1266_vm3, %v3367_v35  ;;  %v965_v34 = vpop.xlane.xlu0 %964  ;;  %v3388_v42 = vpop.eup %2490  ;;  %v1012_v52 = vsub.f32 %v3330_v15, %v3341_v20  ;;  %v2846_v20 = vmov 1.0  }
 0x3a6   : > { %v995_v36 = vmax.f32 %v947_v33, %v965_v34  ;;  %v3395_v45 = vpop.eup %2492  ;;  %v1032_v53 = vmul.f32 1.442695, %v1013_v50  ;;  %v1026_v61 = vmul.f32 1.442695, %v1010_v58  ;;  %2203 = vmatprep.mubr.msk.f32.mxu0 %vm1266_vm3, %v2846_v20 }
 0x3a7   : > { %v1030_v55 = vmul.f32 1.442695, %v1012_v52 }
 0x3a8   : > { %1284 = vst.msk [vmem:[#allocation3 + $0x8] sm:$0xff] %vm1266_vm3, %v995_v36  ;;  %2176 = vmatpush3.xpose.msk.msra.mxu0 %vm1266_vm3, %v3367_v35  ;;  %v1011_v56 = vsub.f32 %v947_v33, %v995_v36 }
 0x3a9   : > { %1100 = vperm.xlu1 %2481, %v3306_v43   ;;  %2177 = vmatprep.subr.msk.mxu0 %vm1266_vm3, %v3378_v39  ;;  %v1015_v43 = vsub.f32 %v3332_v16, %v999_v21  ;;  %v3403_v48 = vpop.eup %2494 }
 0x3aa   : > { %v3410_v51 = vpop.eup %2496  ;;  %v1028_v59 = vmul.f32 1.442695, %v1011_v56 }
 0x3ab   : > { %v1036_v47 = vmul.f32 1.442695, %v1015_v43 }
 0x3ac   : > { %2178 = vmatpush3.xpose.msk.msra.mxu0 %vm1266_vm3, %v3378_v39 }
 0x3ad   : > { %1095 = vperm.xlu1 %2481, %v1001_v60   ;;  %2179 = vmatprep.subr.msk.mxu0 %vm1266_vm3, %v3388_v42  ;;  %2502 = vpow2.f32 %v1036_v47  ;;  %v3418_v54 = vpop.eup %2498 }
 0x3ae   : > { %2504 = vpow2.f32 %v1034_v49  ;;  %v3424_v57 = vpop.eup %2500 }
 0x3af   : > { %2506 = vpow2.f32 %v1032_v53 }
 0x3b0   : > { %2180 = vmatpush3.xpose.msk.msra.mxu0 %vm1266_vm3, %v3388_v42  ;;  %2508 = vpow2.f32 %v1030_v55 }
 0x3b1   : > { %1085 = vperm.xlu1 %2481, %v999_v21   ;;  %2181 = vmatprep.subr.msk.mxu0 %vm1266_vm3, %v3395_v45  ;;  %2510 = vpow2.f32 %v1028_v59 }
 0x3b2   : > { %2512 = vpow2.f32 %v1026_v61 }
 0x3b4   : > { %2182 = vmatpush3.xpose.msk.msra.mxu0 %vm1266_vm3, %v3395_v45 }
 0x3b5   : > { %1075 = vperm.xlu1 %2481, %v997_v30   ;;  %2183 = vmatprep.subr.msk.mxu0 %vm1266_vm3, %v3403_v48 }
 0x3b8   : > { %2184 = vmatpush3.xpose.msk.msra.mxu0 %vm1266_vm3, %v3403_v48 }
 0x3b9   : > { %1065 = vperm.xlu1 %2481, %v995_v36   ;;  %2185 = vmatprep.subr.msk.mxu0 %vm1266_vm3, %v3410_v51 }
 0x3ba   : > { %v3432_v60 = vpop.eup %2502 }
 0x3bb   : > { %v3438_v14 = vpop.eup %2504 }
 0x3bc   : > { %2186 = vmatpush3.xpose.msk.msra.mxu0 %vm1266_vm3, %v3410_v51  ;;  %v3444_v15 = vpop.eup %2506 }
 0x3bd   : > { %2187 = vmatprep.subr.msk.mxu0 %vm1266_vm3, %v3418_v54  ;;  %v3450_v16 = vpop.eup %2508 }
 0x3be   : > { %v3456_v17 = vpop.eup %2510 }
 0x3bf   : > { %v3465_v21 = vpop.eup %2512 }
 0x3c0   : > { %2188 = vmatpush3.xpose.msk.msra.mxu0 %vm1266_vm3, %v3418_v54 }
 0x3c1   : > { %2189 = vmatprep.subr.msk.mxu0 %vm1266_vm3, %v3424_v57 }
 0x3c4   : > { %2190 = vmatpush3.xpose.msk.msra.mxu0 %vm1266_vm3, %v3424_v57 }
 0x3c5   : > { %2191 = vmatprep.subr.msk.mxu0 %vm1266_vm3, %v3432_v60 }
 0x3c8   : > { %2192 = vmatpush3.xpose.msk.msra.mxu0 %vm1266_vm3, %v3432_v60 }
 0x3c9   : > { %2193 = vmatprep.subr.msk.mxu0 %vm1266_vm3, %v3438_v14 }
 0x3cc   : > { %2194 = vmatpush3.xpose.msk.msra.mxu0 %vm1266_vm3, %v3438_v14 }
 0x3cd   : > { %2195 = vmatprep.subr.msk.mxu0 %vm1266_vm3, %v3444_v15 }
 0x3d0   : > { %2196 = vmatpush3.xpose.msk.msra.mxu0 %vm1266_vm3, %v3444_v15 }
 0x3d1   : > { %2197 = vmatprep.subr.msk.mxu0 %vm1266_vm3, %v3450_v16 }
 0x3d4   : > { %2198 = vmatpush3.xpose.msk.msra.mxu0 %vm1266_vm3, %v3450_v16 }
 0x3d5   : > { %2199 = vmatprep.subr.msk.mxu0 %vm1266_vm3, %v3456_v17 }
 0x3d8   : > { %2200 = vmatpush3.xpose.msk.msra.mxu0 %vm1266_vm3, %v3456_v17 }
 0x3d9   : > { %2201 = vmatprep.subr.msk.mxu0 %vm1266_vm3, %v3465_v21 }
 0x3dc   : > { %2202 = vmatpush3.xpose.msk.msra.mxu0 %vm1266_vm3, %v3465_v21 }
 0x3df   : > { %2204 = vmatmul.mubr.msk.f32.vlgmr.msra.gmra.mxu0 %vm1266_vm3, %v2846_v20 }
 0x3e0   : > { %2206 = vmatprep.mubr.msk.f32.mxu0 %vm1266_vm3, %v2846_v20 }
 0x3e3   : > { %2207 = vmatmul.mubr.msk.f32.gmra.mxu0 %vm1266_vm3, %v2846_v20 }
 0x407   : > { %v1136_v23 = vpop.permute.xlu0 %1135 }
 0x408   : > { %v1153_v24 = vsub.f32 %v3269_v12, %v1136_v23 }
 0x40a   : > { %v1184_v25 = vmul.f32 1.442695, %v1153_v24 }
 0x40b   : > { %v1131_v26 = vpop.permute.xlu1 %1130 }
 0x40c   : > { %2514 = vpow2.f32 %v1184_v25  ;;  %v1152_v27 = vsub.f32 %v3273_v13, %v1131_v26 }
 0x40e   : > { %v1182_v29 = vmul.f32 1.442695, %v1152_v27 }
 0x40f   : > { %v1126_v30 = vpop.permute.xlu1 %1125 }
 0x410   : > { %2516 = vpow2.f32 %v1182_v29  ;;  %v1151_v31 = vsub.f32 %v3264_v10, %v1126_v30 }
 0x412   : > { %v1180_v32 = vmul.f32 1.442695, %v1151_v31 }
 0x413   : > { %v1121_v33 = vpop.permute.xlu1 %1120  ;;  %v1091_v34 = vpop.permute.xlu0 %1090 }
 0x414   : > { %2518 = vpow2.f32 %v1180_v32  ;;  %v1150_v36 = vsub.f32 %v3267_v11, %v1121_v33 }
 0x416   : > { %v1178_v37 = vmul.f32 1.442695, %v1150_v36 }
 0x417   : > { %v1116_v38 = vpop.permute.xlu1 %1115  ;;  %v1081_v40 = vpop.permute.xlu0 %1080 }
 0x418   : > { %2520 = vpow2.f32 %v1178_v37  ;;  %v1149_v12 = vsub.f32 %v3260_v8, %v1116_v38  ;;  %v1142_v25 = vsub.f32 %v3250_v3, %v1081_v40 }
 0x419   : > { %v3481_v41 = vpop.eup %2514 }
 0x41a   : > { %v1176_v13 = vmul.f32 1.442695, %v1149_v12  ;;  %2209 = vmatprep.subr.mxu1 %v3481_v41  ;;  %v1162_v31 = vmul.f32 1.442695, %v1142_v25 }
 0x41b   : > { %2210 = vmatpush3.xpose.msra.mxu1 %v3481_v41  ;;  %v3485_v10 = vpop.permute.xlu0 %1070 }
 0x41c   : > { %2522 = vpow2.f32 %v1176_v13  ;;  %v1111_v44 = vpop.permute.xlu1 %1110  ;;  %v1140_v3 = vsub.f32 %v3246_v1, %v3485_v10  ;;  %v2138_v10 = vpop.f32.mrf.mxu0 }
 0x41d   : > { %v3487_v43 = vpop.eup %2516  ;;  %v1148_v11 = vsub.f32 %v3262_v9, %v1111_v44 }
 0x41e   : > { %2211 = vmatprep.subr.mxu1 %v3487_v43  ;;  %v728_v44 = vpop.f32.mrf.mxu0 }
 0x41f   : > { %v1174_v46 = vmul.f32 1.442695, %v1148_v11  ;;  %2212 = vmatpush3.xpose.msra.mxu1 %v3487_v43  ;;  %v1061_v8 = vpop.permute.xlu0 %1060  ;;  %v1186_v11 = vld [vmem:[#allocation4] sm:$0xff] }
 0x420   : > { %v1106_v47 = vpop.permute.xlu1 %1105  ;;  %v1138_v49 = vsub.f32 %v3242_v63, %v1061_v8  ;;  %v1144_v63 = vsub.f32 %v3254_v5, %v1091_v34 }
 0x421   : > { %v3493_v50 = vpop.eup %2518  ;;  %2524 = vpow2.f32 %v1174_v46  ;;  %v1147_v52 = vsub.f32 %v3256_v6, %v1106_v47  ;;  %v1202_v46 = vmul.f32 %v3465_v21, %v1186_v11  ;;  %v1193_v21 = vld [vmem:[#allocation4 + $0x38] sm:$0xff] }
 0x422   : > { %v1154_v53 = vmul.f32 1.442695, %v1138_v49  ;;  %2213 = vmatprep.subr.mxu1 %v3493_v50  ;;  %v1166_v22 = vmul.f32 1.442695, %v1144_v63  ;;  %v1189_v49 = vld [vmem:[#allocation4 + $0x18] sm:$0xff] }
 0x423   : > { %v1172_v55 = vmul.f32 1.442695, %v1147_v52  ;;  %2214 = vmatpush3.xpose.msra.mxu1 %v3493_v50 }
 0x424   : > { %2526 = vpow2.f32 %v1154_v53  ;;  %v1101_v9 = vpop.permute.xlu1 %1100  ;;  %v1187_v53 = vld [vmem:[#allocation4 + $0x8] sm:$0xff] }
 0x425   : > { %v3498_v56 = vpop.eup %2520  ;;  %2528 = vpow2.f32 %v1172_v55  ;;  %v1146_v58 = vsub.f32 %v3258_v7, %v1101_v9 }
 0x426   : > { %2215 = vmatprep.subr.mxu1 %v3498_v56 }
 0x427   : > { %v1170_v59 = vmul.f32 1.442695, %v1146_v58  ;;  %2216 = vmatpush3.xpose.msra.mxu1 %v3498_v56  ;;  %v1188_v58 = vld [vmem:[#allocation4 + $0x10] sm:$0xff] }
 0x428   : > { %v1096_v6 = vpop.permute.xlu1 %1095 }
 0x429   : > { %v3504_v61 = vpop.eup %2522  ;;  %2530 = vpow2.f32 %v1170_v59  ;;  %v1145_v20 = vsub.f32 %v3252_v4, %v1096_v6  ;;  %v1204_v6 = vmul.f32 %v3450_v16, %v1188_v58 }
 0x42a   : > { %2217 = vmatprep.subr.mxu1 %v3504_v61 }
 0x42b   : > { %v1168_v23 = vmul.f32 1.442695, %v1145_v20  ;;  %2218 = vmatpush3.xpose.msra.mxu1 %v3504_v61 }
 0x42c   : > { %v1086_v7 = vpop.permute.xlu1 %1085 }
 0x42d   : > { %2532 = vpow2.f32 %v1168_v23  ;;  %v1143_v24 = vsub.f32 %v3248_v2, %v1086_v7 }
 0x42e   : > { %v3510_v5 = vpop.eup %2524  ;;  %2534 = vpow2.f32 %v1166_v22  ;;  %v1195_v22 = vld [vmem:[#allocation4 + $0x48] sm:$0xff] }
 0x42f   : > { %v1164_v26 = vmul.f32 1.442695, %v1143_v24  ;;  %2219 = vmatprep.subr.mxu1 %v3510_v5  ;;  %v1211_v7 = vmul.f32 %v3403_v48, %v1195_v22  ;;  %v1194_v48 = vld [vmem:[#allocation4 + $0x40] sm:$0xff] }
 0x430   : > { %v1076_v27 = vpop.permute.xlu1 %1075  ;;  %2220 = vmatpush3.xpose.msra.mxu1 %v3510_v5 }
 0x431   : > { %v2527_v4 = vpop.eup %2526  ;;  %v1141_v29 = vsub.f32 %v3244_v0, %v1076_v27  ;;  %2536 = vpow2.f32 %v1164_v26  ;;  %v1158_v0 = vmul.f32 1.442695, %v1140_v3  ;;  %v1197_v26 = vld [vmem:[#allocation4 + $0x58] sm:$0xff] }
 0x432   : > { %v2529_v30 = vpop.eup %2528  ;;  %1218 = vadd.xlane.f32.xlu1 %v2527_v4 }
 0x433   : > { %v1160_v32 = vmul.f32 1.442695, %v1141_v29  ;;  %2221 = vmatprep.subr.mxu1 %v2529_v30 }
 0x434   : > { %v1066_v2 = vpop.permute.xlu1 %1065  ;;  %2222 = vmatpush3.xpose.msra.mxu1 %v2529_v30 }
 0x435   : > { %2538 = vpow2.f32 %v1160_v32  ;;  %v1139_v33 = vsub.f32 %v3240_v62, %v1066_v2  ;;  %v1199_v32 = vld [vmem:[#allocation4 + $0x68] sm:$0xff] }
 0x436   : > { %v2531_v34 = vpop.eup %2530  ;;  %2540 = vpow2.f32 %v1162_v31  ;;  %v1215_v3 = vmul.f32 %v3367_v35, %v1199_v32 }
 0x437   : > { %v1156_v36 = vmul.f32 1.442695, %v1139_v33  ;;  %2223 = vmatprep.subr.mxu1 %v2531_v34  ;;  %v1210_v33 = vmul.f32 %v3410_v51, %v1194_v48 }
 0x438   : > { %2224 = vmatpush3.xpose.msra.mxu1 %v2531_v34 }
 0x439   : > { %2542 = vpow2.f32 %v1156_v36 }
 0x43a   : > { %v2533_v37 = vpop.eup %2532  ;;  %2544 = vpow2.f32 %v1158_v0  ;;  %v1201_v0 = vld [vmem:[#allocation4 + $0x78] sm:$0xff] }
 0x43b   : > { %2225 = vmatprep.subr.mxu1 %v2533_v37  ;;  %v2535_v38 = vpop.eup %2534 }
 0x43c   : > { %2226 = vmatpush3.xpose.msra.mxu1 %v2533_v37 }
 0x43d   : > { %2227 = vmatprep.subr.mxu1 %v2535_v38 }
 0x43e   : > { %v2537_v40 = vpop.eup %2536 }
 0x440   : > { %2228 = vmatpush3.xpose.msra.mxu1 %v2535_v38 }
 0x441   : > { %2229 = vmatprep.subr.mxu1 %v2537_v40 }
 0x442   : > { %v2539_v1 = vpop.eup %2538 }
 0x443   : > { %1224 = vadd.xlane.f32.xlu1 %v2539_v1  ;;  %v2541_v12 = vpop.eup %2540 }
 0x444   : > { %2230 = vmatpush3.xpose.msra.mxu1 %v2537_v40 }
 0x445   : > { %2231 = vmatprep.subr.mxu1 %v2541_v12 }
 0x446   : > { %v2543_v62 = vpop.eup %2542 }
 0x447   : > { %1220 = vadd.xlane.f32.xlu0 %v2543_v62  ;;  %1228 = vadd.xlane.f32.xlu1 %v2537_v40  ;;  %v2545_v13 = vpop.eup %2544 }
 0x448   : > { %2232 = vmatpush3.xpose.msra.mxu1 %v2541_v12 }
 0x449   : > { %2233 = vmatprep.subr.mxu1 %v2539_v1 }
 0x44b   : > { %1222 = vadd.xlane.f32.xlu0 %v2545_v13  ;;  %1232 = vadd.xlane.f32.xlu1 %v2533_v37 }
 0x44c   : > { %2234 = vmatpush3.xpose.msra.mxu1 %v2539_v1 }
 0x44d   : > { %2235 = vmatprep.subr.mxu1 %v2545_v13 }
 0x44f   : > { %1226 = vadd.xlane.f32.xlu0 %v2541_v12  ;;  %1236 = vadd.xlane.f32.xlu1 %v2529_v30 }
 0x450   : > { %2236 = vmatpush3.xpose.msra.mxu1 %v2545_v13 }
 0x451   : > { %2237 = vmatprep.subr.mxu1 %v2543_v62 }
 0x453   : > { %1230 = vadd.xlane.f32.xlu0 %v2535_v38  ;;  %1240 = vadd.xlane.f32.xlu1 %v3504_v61  ;;  %v1217_v38 = vmul.f32 %v3338_v19, %v1201_v0 }
 0x454   : > { %2238 = vmatpush3.xpose.msra.mxu1 %v2543_v62  ;;  %v1198_v62 = vld [vmem:[#allocation4 + $0x60] sm:$0xff] }
 0x455   : > { %2239 = vmatprep.subr.mxu1 %v2527_v4  ;;  %v1214_v51 = vmul.f32 %v3378_v39, %v1198_v62 }
 0x457   : > { %1234 = vadd.xlane.f32.xlu0 %v2531_v34  ;;  %1244 = vadd.xlane.f32.xlu1 %v3493_v50  ;;  %v1205_v50 = vmul.f32 %v3444_v15, %v1189_v49  ;;  %v1209_v15 = vmul.f32 %v3418_v54, %v1193_v21  ;;  %v1192_v54 = vld [vmem:[#allocation4 + $0x30] sm:$0xff] }
 0x458   : > { %2240 = vmatpush3.xpose.msra.mxu1 %v2527_v4  ;;  %v1213_v4 = vmul.f32 %v3388_v42, %v1197_v26  ;;  %v1208_v29 = vmul.f32 %v3424_v57, %v1192_v54  ;;  %v1196_v42 = vld [vmem:[#allocation4 + $0x50] sm:$0xff] }
 0x459   : > { %v1212_v40 = vmul.f32 %v3395_v45, %v1196_v42 }
 0x45b   : > { %1238 = vadd.xlane.f32.xlu0 %v3510_v5  ;;  %1248 = vadd.xlane.f32.xlu1 %v3481_v41  ;;  %v1191_v41 = vld [vmem:[#allocation4 + $0x28] sm:$0xff] }
 0x45c   : > { %2242 = vmatmul.mubr.f32.vlgmr.msra.gmra.mxu1 %v3462_v18  ;;  %v1207_v55 = vmul.f32 %v3432_v60, %v1191_v41  ;;  %v1190_v60 = vld [vmem:[#allocation4 + $0x20] sm:$0xff] }
 0x45d   : > { %2244 = vmatprep.mubr.f32.mxu1 %v728_v44  ;;  %v1206_v24 = vmul.f32 %v3438_v14, %v1190_v60  ;;  %v1200_v44 = vld [vmem:[#allocation4 + $0x70] sm:$0xff] }
 0x45e   : > { %v1216_v19 = vmul.f32 %v3357_v28, %v1200_v44 }
 0x45f   : > { %1242 = vadd.xlane.f32.xlu0 %v3498_v56 }
 0x460   : > { %2245 = vmatmul.mubr.f32.gmra.mxu1 %v2138_v10 }
 0x463   : > { %1246 = vadd.xlane.f32.xlu0 %v3487_v43  ;;  %v1203_v43 = vmul.f32 %v3456_v17, %v1187_v53  ;;  %v1523_v53 = vld [vmem:[#allocation5 + $0x8] sm:$0xff] }
 0x4bb   : > { %v1219_v8 = vpop.xlane.xlu1 %1218 }
 0x4bc   : > { %v1250_v47 = vadd.f32 %v1219_v8, %v1202_v46  ;;  %v2205_v8 = vpop.f32.mrf.mxu0 }
 0x4be   : > { %1267 = vst.msk [vmem:[#allocation4] sm:$0xff] %vm1266_vm3, %v1250_v47  ;;  %v1521_v47 = vld [vmem:[#allocation5] sm:$0xff]  ;;  %v1416_v49 = vpop.f32.mrf.mxu0 }
 0x4c0   : > { %v2208_v41 = vpop.f32.mrf.mxu0 }
 0x4cc   : > { %v1225_v52 = vpop.xlane.xlu1 %1224 }
 0x4cd   : > { %v1253_v18 = vadd.f32 %v1225_v52, %v1205_v50  ;;  %v1525_v50 = vmul.f32 %v2205_v8, %v1521_v47  ;;  %v1520_v52 = vld [vmem:[#allocation5 + $0x10] sm:$0xff] }
 0x4ce   : > { %v1524_v39 = vmul.f32 %v1520_v52, %v1416_v49 }
 0x4cf   : > { %1270 = vst.msk [vmem:[#allocation4 + $0x18] sm:$0xff] %vm1266_vm3, %v1253_v18 }
 0x4d0   : > { %v1229_v9 = vpop.xlane.xlu1 %1228  ;;  %v1221_v56 = vpop.xlane.xlu0 %1220 }
 0x4d1   : > { %v1255_v63 = vadd.f32 %v1229_v9, %v1207_v55  ;;  %v1251_v59 = vadd.f32 %v1221_v56, %v1203_v43  ;;  %v1527_v55 = vmul.f32 %v2208_v41, %v1523_v53  ;;  %v1426_v9 = vpop.f32.mrf.mxu0  ;;  %v1522_v56 = vld [vmem:[#allocation5 + $0x18] sm:$0xff] }
 0x4d3   : > { %1272 = vst.msk [vmem:[#allocation4 + $0x28] sm:$0xff] %vm1266_vm3, %v1255_v63  ;;  %1268 = vst.msk [vmem:[#allocation4 + $0x8] sm:$0xff] %vm1266_vm3, %v1251_v59  ;;  %v1526_v63 = vmul.f32 %v1522_v56, %v1426_v9 }
 0x4d4   : > { %v1233_v61 = vpop.xlane.xlu1 %1232  ;;  %v1223_v20 = vpop.xlane.xlu0 %1222 }
 0x4d5   : > { %v1257_v23 = vadd.f32 %v1233_v61, %v1209_v15  ;;  %v1252_v17 = vadd.f32 %v1223_v20, %v1204_v6 }
 0x4d7   : > { %1274 = vst.msk [vmem:[#allocation4 + $0x38] sm:$0xff] %vm1266_vm3, %v1257_v23  ;;  %1269 = vst.msk [vmem:[#allocation4 + $0x10] sm:$0xff] %vm1266_vm3, %v1252_v17 }
 0x4d8   : > { %v1237_v5 = vpop.xlane.xlu1 %1236  ;;  %v1227_v25 = vpop.xlane.xlu0 %1226 }
 0x4d9   : > { %v1259_v27 = vadd.f32 %v1237_v5, %v1211_v7  ;;  %v1254_v16 = vadd.f32 %v1227_v25, %v1206_v24 }
 0x4db   : > { %1276 = vst.msk [vmem:[#allocation4 + $0x48] sm:$0xff] %vm1266_vm3, %v1259_v27  ;;  %1271 = vst.msk [vmem:[#allocation4 + $0x20] sm:$0xff] %vm1266_vm3, %v1254_v16 }
 0x4dc   : > { %v1241_v30 = vpop.xlane.xlu1 %1240  ;;  %v1231_v31 = vpop.xlane.xlu0 %1230 }
 0x4dd   : > { %v1261_v2 = vadd.f32 %v1241_v30, %v1213_v4  ;;  %v1256_v14 = vadd.f32 %v1231_v31, %v1208_v29 }
 0x4df   : > { %1278 = vst.msk [vmem:[#allocation4 + $0x58] sm:$0xff] %vm1266_vm3, %v1261_v2  ;;  %1273 = vst.msk [vmem:[#allocation4 + $0x30] sm:$0xff] %vm1266_vm3, %v1256_v14 }
 0x4e0   : > { %v1245_v34 = vpop.xlane.xlu1 %1244  ;;  %v1235_v36 = vpop.xlane.xlu0 %1234 }
 0x4e1   : > { %v1263_v37 = vadd.f32 %v1245_v34, %v1215_v3  ;;  %v1258_v57 = vadd.f32 %v1235_v36, %v1210_v33 }
 0x4e3   : > { %1280 = vst.msk [vmem:[#allocation4 + $0x68] sm:$0xff] %vm1266_vm3, %v1263_v37  ;;  %1275 = vst.msk [vmem:[#allocation4 + $0x40] sm:$0xff] %vm1266_vm3, %v1258_v57 }
 0x4e4   : > { %v1249_v1 = vpop.xlane.xlu1 %1248  ;;  %v1239_v12 = vpop.xlane.xlu0 %1238 }
 0x4e5   : > { %v1265_v35 = vadd.f32 %v1249_v1, %v1217_v38  ;;  %v1260_v13 = vadd.f32 %v1239_v12, %v1212_v40 }
 0x4e7   : > { %1282 = vst.msk [vmem:[#allocation4 + $0x78] sm:$0xff] %vm1266_vm3, %v1265_v35  ;;  %1277 = vst.msk [vmem:[#allocation4 + $0x50] sm:$0xff] %vm1266_vm3, %v1260_v13 }
 0x4e8   : > { %v1243_v10 = vpop.xlane.xlu0 %1242 }
 0x4e9   : > { %v1262_v11 = vadd.f32 %v1243_v10, %v1214_v51 }
 0x4eb   : > { %1279 = vst.msk [vmem:[#allocation4 + $0x60] sm:$0xff] %vm1266_vm3, %v1262_v11 }
 0x4ec   : > { %v1247_v46 = vpop.xlane.xlu0 %1246 }
 0x4ed   : > { %v1264_v45 = vadd.f32 %v1247_v46, %v1216_v19 }
 0x4ef   : > { %1281 = vst.msk [vmem:[#allocation4 + $0x70] sm:$0xff] %vm1266_vm3, %v1264_v45 }
 0x51c   : > { %v2243_v18 = vpop.f32.mrf.mxu1 }
 0x51d   : > { %v1529_v43 = vadd.f32 %v2243_v18, %v1525_v50 }
 0x51e   : > { %v1501_v21 = vpop.f32.mrf.mxu1 }
 0x51f   : > { %1533 = vst [vmem:[#allocation5] sm:$0xff] %v1529_v43  ;;  %v1528_v28 = vadd.f32 %v1524_v39, %v1501_v21 }
 0x520   : > { %v2246_v58 = vpop.f32.mrf.mxu1 }
 0x521   : > { %1532 = vst [vmem:[#allocation5 + $0x10] sm:$0xff] %v1528_v28  ;;  %v1531_v59 = vadd.f32 %v2246_v58, %v1527_v55  ;;  %1539 = sbr.rel (%p1959_p3) target bundleno = 1599 (0x63f), region = 64 }
 0x522   : > { %v1511_v15 = vpop.f32.mrf.mxu1 }
 0x523   : > { %1535 = vst [vmem:[#allocation5 + $0x8] sm:$0xff] %v1531_v59  ;;  %v1530_v6 = vadd.f32 %v1526_v63, %v1511_v15 }
 0x525   : > { %1534 = vst [vmem:[#allocation5 + $0x18] sm:$0xff] %v1530_v6 }
 0x526   : > { %v1555_v61 = vld [vmem:[#allocation4 + $0x78] sm:$0xff]  ;;  %v1554_v20 = vld [vmem:[#allocation4 + $0x70] sm:$0xff]  ;;  %v2847_v22 = vmov 1.0   ;;  %v1553_v60 = vld [vmem:[#allocation4 + $0x68] sm:$0xff]  ;;  %v1714_v13 = vstv %s1713_s27 }
 0x527   : > { %2546 = vrcp.f32 %v1555_v61  ;;  %2279 = vmatprep.mubr.msk.f32.mxu0 %vm1266_vm3, %v2847_v22  ;;  %2282 = vmatprep.mubr.msk.f32.mxu1 %vm1266_vm3, %v2847_v22  ;;  %v1552_v23 = vld [vmem:[#allocation4 + $0x60] sm:$0xff]  ;;  %v1551_v17 = vld [vmem:[#allocation4 + $0x58] sm:$0xff]  ;;  %v1550_v24 = vld [vmem:[#allocation4 + $0x50] sm:$0xff] }
 0x528   : > { %2548 = vrcp.f32 %v1554_v20  ;;  %v1549_v26 = vld [vmem:[#allocation4 + $0x48] sm:$0xff]  ;;  %v1548_v27 = vld [vmem:[#allocation4 + $0x40] sm:$0xff]  ;;  %v1547_v4 = vld [vmem:[#allocation4 + $0x38] sm:$0xff] }
 0x529   : > { %2550 = vrcp.f32 %v1553_v60  ;;  %v1546_v30 = vld [vmem:[#allocation4 + $0x30] sm:$0xff]  ;;  %v1545_v32 = vld [vmem:[#allocation4 + $0x28] sm:$0xff]  ;;  %v1544_v2 = vld [vmem:[#allocation4 + $0x20] sm:$0xff] }
 0x52a   : > { %2552 = vrcp.f32 %v1552_v23  ;;  %v1543_v3 = vld [vmem:[#allocation4 + $0x18] sm:$0xff]  ;;  %v1542_v34 = vld [vmem:[#allocation4 + $0x10] sm:$0xff]  ;;  %v1541_v0 = vld [vmem:[#allocation4 + $0x8] sm:$0xff] }
 0x52b   : > { %2554 = vrcp.f32 %v1551_v17  ;;  %v1540_v37 = vld [vmem:[#allocation4] sm:$0xff]  ;;  %v1708_v62 = vld [vmem:[#allocation5 + $0x8] sm:$0xff]  ;;  %v1705_v10 = vld [vmem:[#allocation5 + $0x10] sm:$0xff] }
 0x52c   : > { %2556 = vrcp.f32 %v1550_v24  ;;  %v1706_v12 = vld [vmem:[#allocation5] sm:$0xff]  ;;  %v1707_v44 = vld [vmem:[#allocation5 + $0x18] sm:$0xff]  ;;  %v1720_v46 = vld [vmem:[%s3107_s10 + $0x8] sm:$0xff] }
 0x52d   : > { %2558 = vrcp.f32 %v1549_v26  ;;  %v1722_v45 = vld [vmem:[%s3107_s10 + $0x18] sm:$0xff]  ;;  %v1719_v53 = vld [vmem:[%s3107_s10] sm:$0xff]  ;;  %v1721_v18 = vld [vmem:[%s3107_s10 + $0x10] sm:$0xff] }
 0x52e   : > { %2560 = vrcp.f32 %v1548_v27 }
 0x52f   : > { %2562 = vrcp.f32 %v1547_v4 }
 0x530   : > { %2564 = vrcp.f32 %v1546_v30 }
 0x531   : > { %2566 = vrcp.f32 %v1545_v32 }
 0x532   : > { %2568 = vrcp.f32 %v1544_v2 }
 0x533   : > { %2570 = vrcp.f32 %v1543_v3 }
 0x534   : > { %v2547_v7 = vpop.eup %2546  ;;  %2572 = vrcp.f32 %v1542_v34 }
 0x535   : > { %v2549_v5 = vpop.eup %2548  ;;  %2247 = vmatprep.subr.msk.mxu0 %vm1266_vm3, %v2547_v7  ;;  %2293 = vmatprep.subr.msk.mxu1 %vm1266_vm3, %v2547_v7  ;;  %2574 = vrcp.f32 %v1541_v0 }
 0x536   : > { %2248 = vmatpush3.xpose.msk.msra.mxu0 %vm1266_vm3, %v2547_v7  ;;  %2309 = vmatpush3.xpose.msk.msra.mxu1 %vm1266_vm3, %v2547_v7  ;;  %v2551_v25 = vpop.eup %2550  ;;  %2576 = vrcp.f32 %v1540_v37 }
 0x537   : > { %2249 = vmatprep.subr.msk.mxu0 %vm1266_vm3, %v2549_v5  ;;  %2294 = vmatprep.subr.msk.mxu1 %vm1266_vm3, %v2549_v5  ;;  %v2553_v54 = vpop.eup %2552 }
 0x538   : > { %v2555_v16 = vpop.eup %2554 }
 0x539   : > { %v2557_v29 = vpop.eup %2556 }
 0x53a   : > { %2250 = vmatpush3.xpose.msk.msra.mxu0 %vm1266_vm3, %v2549_v5  ;;  %2310 = vmatpush3.xpose.msk.msra.mxu1 %vm1266_vm3, %v2549_v5  ;;  %v2559_v31 = vpop.eup %2558 }
 0x53b   : > { %2251 = vmatprep.subr.msk.mxu0 %vm1266_vm3, %v2551_v25  ;;  %2295 = vmatprep.subr.msk.mxu1 %vm1266_vm3, %v2551_v25  ;;  %v2561_v48 = vpop.eup %2560 }
 0x53c   : > { %v2563_v14 = vpop.eup %2562 }
 0x53d   : > { %v2565_v33 = vpop.eup %2564 }
 0x53e   : > { %2252 = vmatpush3.xpose.msk.msra.mxu0 %vm1266_vm3, %v2551_v25  ;;  %2311 = vmatpush3.xpose.msk.msra.mxu1 %vm1266_vm3, %v2551_v25  ;;  %v2567_v36 = vpop.eup %2566 }
 0x53f   : > { %2253 = vmatprep.subr.msk.mxu0 %vm1266_vm3, %v2553_v54  ;;  %2296 = vmatprep.subr.msk.mxu1 %vm1266_vm3, %v2553_v54  ;;  %v2569_v42 = vpop.eup %2568 }
 0x540   : > { %v2571_v57 = vpop.eup %2570 }
 0x541   : > { %v2573_v38 = vpop.eup %2572 }
 0x542   : > { %2254 = vmatpush3.xpose.msk.msra.mxu0 %vm1266_vm3, %v2553_v54  ;;  %2312 = vmatpush3.xpose.msk.msra.mxu1 %vm1266_vm3, %v2553_v54  ;;  %v2575_v40 = vpop.eup %2574 }
 0x543   : > { %2255 = vmatprep.subr.msk.mxu0 %vm1266_vm3, %v2555_v16  ;;  %2297 = vmatprep.subr.msk.mxu1 %vm1266_vm3, %v2555_v16  ;;  %v2577_v1 = vpop.eup %2576 }
 0x546   : > { %2256 = vmatpush3.xpose.msk.msra.mxu0 %vm1266_vm3, %v2555_v16  ;;  %2313 = vmatpush3.xpose.msk.msra.mxu1 %vm1266_vm3, %v2555_v16 }
 0x547   : > { %2257 = vmatprep.subr.msk.mxu0 %vm1266_vm3, %v2557_v29  ;;  %2298 = vmatprep.subr.msk.mxu1 %vm1266_vm3, %v2557_v29 }
 0x54a   : > { %2258 = vmatpush3.xpose.msk.msra.mxu0 %vm1266_vm3, %v2557_v29  ;;  %2314 = vmatpush3.xpose.msk.msra.mxu1 %vm1266_vm3, %v2557_v29 }
 0x54b   : > { %2259 = vmatprep.subr.msk.mxu0 %vm1266_vm3, %v2559_v31  ;;  %2299 = vmatprep.subr.msk.mxu1 %vm1266_vm3, %v2559_v31 }
 0x54e   : > { %2260 = vmatpush3.xpose.msk.msra.mxu0 %vm1266_vm3, %v2559_v31  ;;  %2315 = vmatpush3.xpose.msk.msra.mxu1 %vm1266_vm3, %v2559_v31 }
 0x54f   : > { %2261 = vmatprep.subr.msk.mxu0 %vm1266_vm3, %v2561_v48  ;;  %2300 = vmatprep.subr.msk.mxu1 %vm1266_vm3, %v2561_v48 }
 0x552   : > { %2262 = vmatpush3.xpose.msk.msra.mxu0 %vm1266_vm3, %v2561_v48  ;;  %2316 = vmatpush3.xpose.msk.msra.mxu1 %vm1266_vm3, %v2561_v48 }
 0x553   : > { %2263 = vmatprep.subr.msk.mxu0 %vm1266_vm3, %v2563_v14  ;;  %2301 = vmatprep.subr.msk.mxu1 %vm1266_vm3, %v2563_v14 }
 0x556   : > { %2264 = vmatpush3.xpose.msk.msra.mxu0 %vm1266_vm3, %v2563_v14  ;;  %2317 = vmatpush3.xpose.msk.msra.mxu1 %vm1266_vm3, %v2563_v14 }
 0x557   : > { %2265 = vmatprep.subr.msk.mxu0 %vm1266_vm3, %v2565_v33  ;;  %2302 = vmatprep.subr.msk.mxu1 %vm1266_vm3, %v2565_v33 }
 0x55a   : > { %2266 = vmatpush3.xpose.msk.msra.mxu0 %vm1266_vm3, %v2565_v33  ;;  %2318 = vmatpush3.xpose.msk.msra.mxu1 %vm1266_vm3, %v2565_v33 }
 0x55b   : > { %2267 = vmatprep.subr.msk.mxu0 %vm1266_vm3, %v2567_v36  ;;  %2303 = vmatprep.subr.msk.mxu1 %vm1266_vm3, %v2567_v36 }
 0x55e   : > { %2268 = vmatpush3.xpose.msk.msra.mxu0 %vm1266_vm3, %v2567_v36  ;;  %2319 = vmatpush3.xpose.msk.msra.mxu1 %vm1266_vm3, %v2567_v36 }
 0x55f   : > { %2269 = vmatprep.subr.msk.mxu0 %vm1266_vm3, %v2569_v42  ;;  %2304 = vmatprep.subr.msk.mxu1 %vm1266_vm3, %v2569_v42 }
 0x562   : > { %2270 = vmatpush3.xpose.msk.msra.mxu0 %vm1266_vm3, %v2569_v42  ;;  %2320 = vmatpush3.xpose.msk.msra.mxu1 %vm1266_vm3, %v2569_v42 }
 0x563   : > { %2271 = vmatprep.subr.msk.mxu0 %vm1266_vm3, %v2571_v57  ;;  %2305 = vmatprep.subr.msk.mxu1 %vm1266_vm3, %v2571_v57 }
 0x566   : > { %2272 = vmatpush3.xpose.msk.msra.mxu0 %vm1266_vm3, %v2571_v57  ;;  %2321 = vmatpush3.xpose.msk.msra.mxu1 %vm1266_vm3, %v2571_v57 }
 0x567   : > { %2273 = vmatprep.subr.msk.mxu0 %vm1266_vm3, %v2573_v38  ;;  %2306 = vmatprep.subr.msk.mxu1 %vm1266_vm3, %v2573_v38 }
 0x56a   : > { %2274 = vmatpush3.xpose.msk.msra.mxu0 %vm1266_vm3, %v2573_v38  ;;  %2322 = vmatpush3.xpose.msk.msra.mxu1 %vm1266_vm3, %v2573_v38 }
 0x56b   : > { %2275 = vmatprep.subr.msk.mxu0 %vm1266_vm3, %v2575_v40  ;;  %2307 = vmatprep.subr.msk.mxu1 %vm1266_vm3, %v2575_v40 }
 0x56e   : > { %2276 = vmatpush3.xpose.msk.msra.mxu0 %vm1266_vm3, %v2575_v40  ;;  %2323 = vmatpush3.xpose.msk.msra.mxu1 %vm1266_vm3, %v2575_v40 }
 0x56f   : > { %2277 = vmatprep.subr.msk.mxu0 %vm1266_vm3, %v2577_v1  ;;  %2308 = vmatprep.subr.msk.mxu1 %vm1266_vm3, %v2577_v1 }
 0x572   : > { %2278 = vmatpush3.xpose.msk.msra.mxu0 %vm1266_vm3, %v2577_v1  ;;  %2324 = vmatpush3.xpose.msk.msra.mxu1 %vm1266_vm3, %v2577_v1 }
 0x575   : > { %2280 = vmatmul.mubr.msk.f32.vlgmr.msra.gmra.mxu0 %vm1266_vm3, %v2847_v22  ;;  %2283 = vmatmul.mubr.msk.f32.vlgmr.msra.gmra.mxu1 %vm1266_vm3, %v2847_v22 }
 0x635   : > { %v2281_v35 = vpop.f32.mrf.mxu0  ;;  %v2284_v51 = vpop.f32.mrf.mxu1 }
 0x636   : > { %v1710_v11 = vmul.f32 %v2281_v35, %v1706_v12  ;;  %v1712_v19 = vmul.f32 %v2284_v51, %v1708_v62 }
 0x637   : > { %v1686_v8 = vpop.f32.mrf.mxu0  ;;  %v1696_v47 = vpop.f32.mrf.mxu1 }
 0x638   : > { %v1716_v49 = vmul.f32 %v1714_v13, %v1710_v11  ;;  %v1718_v50 = vmul.f32 %v1714_v13, %v1712_v19  ;;  %v1709_v52 = vmul.f32 %v1705_v10, %v1686_v8  ;;  %v1711_v41 = vmul.f32 %v1707_v44, %v1696_v47 }
 0x63a   : > { %v1724_v39 = vadd.f32 %v1720_v46, %v1716_v49  ;;  %v1726_v55 = vadd.f32 %v1722_v45, %v1718_v50  ;;  %v1715_v43 = vmul.f32 %v1714_v13, %v1709_v52  ;;  %v1717_v9 = vmul.f32 %v1714_v13, %v1711_v41 }
 0x63c   : > { %1728 = vst [vmem:[%s3129_s5 + $0x8] sm:$0xff] %v1724_v39  ;;  %1730 = vst [vmem:[%s3129_s5 + $0x18] sm:$0xff] %v1726_v55  ;;  %v1723_v56 = vadd.f32 %v1719_v53, %v1715_v43  ;;  %v1725_v21 = vadd.f32 %v1721_v18, %v1717_v9 }
 0x63e   : > { %1727 = vst [vmem:[%s3129_s5] sm:$0xff] %v1723_v56  ;;  %1729 = vst [vmem:[%s3129_s5 + $0x10] sm:$0xff] %v1725_v21 }
 0x63f PF: > { %s3795_s2 = sld [smem:[#allocation26_spill]]  ;;  %s1746_s16 = sshll.u32 %s3129_s5, 4  ;;  %s3642_s16 = int_to_ptr.vmem [resolvable:$true] %s1746_s16 }
 0x640   : > { %s3796_s20 = sld [smem:[#allocation25_spill]]  ;;  %s1732_s19 = scalar_lea.sflag [#allocation9], %s3103_s4 }
 0x641   : > { %s3798_s23 = sld [smem:[#allocation37_spill]]  ;;  %s2686_s14 = scalar_lea.vmem %s3642_s16, 512 }
 0x642   : > { %p2687_p5 = scmp.ne.s32.totalorder %s3642_s16, %s2686_s14  ;;  %s2848_s12 = smov [#allocation15]  }
 0x643   : > { %s2690_s15 = sshll.u32 %s2848_s12, 4  ;;  %s2691_s15 = int_to_ptr.vmem [resolvable:$false] %s2690_s15 }
 0x644   : > { %p2688_p4 = pnand %p2687_p5, %p3049_p7  ;;  %s2692_s5 = scalar_lea.vmem %s2691_s15, 1024 }
 0x645   : > { %s1981_s18 = sshll.u32 %s3795_s2, 3  ;;  %p2693_p2 = scmp.lt.s32.totalorder %s3642_s16, %s2691_s15 }
 0x646   : > { %s1743_s26 = sadd.s32 %s3796_s20, %s1981_s18  ;;  %p2689_p10 = pneg %p2688_p4 }
 0x647   : > { %s1982_s0 = sshll.u32 %s1743_s26, 7  ;;  %s3799_s3 = smov %s3798_s23 }
 0x648   : > { %s3647_s13 = scalar_lea.hbm %s3798_s23, %s1982_s0  ;;  %p2694_p8 = scmp.lt.s32.totalorder %s2692_s5, %s2686_s14 }
 0x64a   : > { %p2695_p12 = por %p2694_p8, %p2693_p2 }
 0x64c   : > { %p2696_p13 = pnand %p2695_p12, %p2689_p10 }
 0x64e   : > { %2699 = shalt.err (!%p2696_p13)
}
 0x64f   : > { %s2700_s11 = scalar_lea.hbm %s3647_s13, 512  ;;  %s2704_s2 = scalar_lea.hbm %s3799_s3, 2048 }
 0x650   : > { %p2701_p9 = scmp.ne.s32.totalorder %s3647_s13, %s2700_s11  ;;  %p2705_p0 = scmp.lt.s32.totalorder %s3647_s13, %s3799_s3 }
 0x651   : > { %p2706_p11 = scmp.lt.s32.totalorder %s2704_s2, %s2700_s11 }
 0x652   : > { %p2702_p1 = pnand %p2701_p9, %p3049_p7 }
 0x653   : > { %p2707_p3 = por %p2706_p11, %p2705_p0 }
 0x654   : > { %p2703_p6 = pneg %p2702_p1 }
 0x656   : > { %p2708_p5 = pnand %p2707_p3, %p2703_p6 }
 0x658   : > { %2711 = shalt.err (!%p2708_p5)
}
 0x659   : > { %s2849_s26 = smov 128   ;;  %s2850_s0 = smov 256  }
 0x65a   : > { %s2851_s10 = smov 8  }
 0x65b   : > { %2337 = dma.vmem_to_hbm [thread:$0]  (%p3049_p7), %s3642_s16, 512, %s3647_s13, %s1732_s19, %s2849_s26, %s2850_s0, %s2851_s10  }
 0x65c PF: > { %s3800_s17 = sld [smem:[#allocation22_spill]]  ;;  %p2362_p4 = scmp.ge.s32.totalorder %s2834_s6, 2 }
 0x65d   : > { %s3801_s23 = sld [smem:[#allocation30_spill]] }
 0x662   : > { %s1761_s14 = sand.u32 1, %s3800_s17  }
 0x663   : > { %p3802_p10 = scmp.ne.s32.totalorder %s3801_s23, 0  ;;  %s1762_s12 = scalar_lea.sflag [#allocation9], %s1761_s14 }
 0x665   : > { %p2354_p2 = pnand %p2362_p4, %p3802_p10 }
 0x667   : > { %p2355_p8 = pneg %p2354_p2 }
 0x669   : > { %2781 = dma.done.wait (%p2355_p8), %s1762_s12, 512  }
 0x66a   : > { %2783 = vsyncadd (%p2355_p8), %s1762_s12, 4294966784  ;;  %s26_s6 = sadd.s32 1, %s2834_s6   ;;  %s3804_s20 = sld [smem:[#allocation21_spill]] }
 0x66b   : > { %p3677_p12 = scmp.ge.s32.totalorder %s26_s6, 10   ;;  %s3805_s23 = sld [smem:[#allocation23_spill]] }
 0x66c   : > { %s3806_s7 = sld [smem:[#allocation31_spill]]  ;;  %s3808_s21 = smov %s2794_s22 }
 0x66d   : > { %s3807_s16 = sld [smem:[#allocation33_spill]]  ;;  %s3809_s22 = smov %s3072_s24 }
 0x66e   : > { %s3810_s24 = smov %s2806_s25  ;;  %s3811_s25 = smov %s3069_s9 }
 0x66f   : > { %s3812_s4 = smov %s2822_s28  ;;  %s3813_s26 = smov %s2826_s29 }
 0x670   : > { %s3814_s27 = smov %s2830_s30  ;;  %s3817_s30 = smov %s3827_s8 }
 0x671   :  { %25 = sbr.rel (!%p3677_p12) target bundleno = 19 (0x13), region = 114 }
 0x672   : > { %s3815_s28 = smov %s3806_s7 }
 0x673   : > { %s3816_s29 = smov %s3807_s16 }
 0x676   :  { %1767 = vsyncpa [#allocation8], 1 }
 0x677   :  { %1769 = vsyncpa [#allocation8 + $0x1], 1 }
 0x678   :  { %1770 = vsyncpa [#allocation11], 1 }
 0x679   :  { %1772 = vsyncpa [#allocation11 + $0x1], 1 }
 0x67a   :  { %1773 = vsyncpa [#allocation14], 1 }
 0x67b   :  { %1774 = vsyncpa [#allocation9], 1 }
 0x67c   :  { %1776 = vsyncpa [#allocation9 + $0x1], 1 }

</bundles_post_ra>
